<compile_context>
chip_gen: v7x
topology: tpu7x:2x2x1
jax: 0.10.0
libtpu: 0.0.40
codegen_flags: <defaults>
</compile_context>

<pallas_src>
import math

import jax
import jax.numpy as jnp
from jax.experimental import pallas as pl
from jax.experimental.pallas import tpu as pltpu

# ------------------------------ configuration ------------------------------
INPUT_DIM = 4        # input_dim (D)
INPUT_LEN = 16       # input_len (L)
OUTPUT_LEN = 8       # output_len
ENC_HIDDEN = 32      # enc_hidden (H)
NUM_LEVELS = 3       # num_levels
K_IMP = 2            # K_IMP
BATCH = 2

TOTAL_LEVEL = NUM_LEVELS - 1              # 2 (root level index)
K_TOTAL = (2 ** TOTAL_LEVEL) * K_IMP      # 8 IMFs feeding the forecast head
KR = max(K_TOTAL // 2, 1)                 # SE reduction width

BN_EPS = 1e-5
BN_SCALE = 1.0 / math.sqrt(1.0 + BN_EPS)  # eval-mode BatchNorm(affine=False), fresh stats
NEG_SLOPE = 0.01                          # LeakyReLU default

_N_STAGE_REFS = 9                         # refs per non-leaf stage
_N_FORECAST_REFS = 10


# ------------------------------ fused Pallas kernel ------------------------------
def _dpad_kernel(*refs):
    """Entire D-PAD tree forward for one (N, L) slab, fully resident in VMEM.

    Arg layout (all VMEM refs):
      [0]                         x            (N, L)
      per non-leaf stage s (root first), 9 refs:
          taps (4, m*K*L), bs_w1, bs_b1, bs_w2, bs_b2, rp_w1, rp_b1, rp_w2, rp_b2
      [..]                        leaf taps    (4, K_TOTAL*L)
      [..]                        forecast: fc1_w, fc1_b, fc2_w, fc2_b,
                                  se_w1, se_b1, se_w2, se_b2, wout, bout
      [-1]                        o            (N, OUTPUT_LEN)
    """
    x_ref = refs[0]
    o_ref = refs[-1]
    idx = 1
    stage_refs = []
    for _ in range(TOTAL_LEVEL):
        stage_refs.append(refs[idx:idx + _N_STAGE_REFS])
        idx += _N_STAGE_REFS
    leaf_taps_ref = refs[idx]
    idx += 1
    (fc1_w, fc1_b, fc2_w, fc2_b,
     se_w1, se_b1, se_w2, se_b2, wout, bout) = refs[idx:idx + _N_FORECAST_REFS]

    n = x_ref.shape[0]
    f32 = jnp.float32
    L = INPUT_LEN

    def leaky(z):
        return jnp.where(z >= 0.0, z, NEG_SLOPE * z)

    def dot(a, b):
        return jnp.dot(a, b, preferred_element_type=f32)

    def mcd(z_nodes, taps_ref, m):
        """Conv2d(1, K_IMP, (1,3), padding=(0,1)) for all `m` nodes of a level at once.

        z_nodes: (n, m*L) lane-stacked node inputs.
        Returns (n, m*K_IMP*L) lane-stacked IMFs (per node, channels in order).
        """
        segs = []
        for i in range(m):
            s = z_nodes[:, i * L:(i + 1) * L]
            for _ in range(K_IMP):
                segs.append(s)
        zd = jnp.concatenate(segs, axis=1)                     # (n, m*K*L)
        w = zd.shape[1]
        pos = jax.lax.broadcasted_iota(jnp.int32, (n, w), 1) % L
        # roll(+1)[l] = z[l-1]; roll(w-1)[l] = z[l+1]; masks zero cross-segment leakage.
        zp = jnp.where(pos >= 1, pltpu.roll(zd, 1, axis=1), 0.0)
        zn = jnp.where(pos <= L - 2, pltpu.roll(zd, w - 1, axis=1), 0.0)
        t = taps_ref[...]                                      # (4, w)
        return t[0:1, :] * zp + t[1:2, :] * zd + t[2:3, :] * zn + t[3:4, :]

    def nonleaf_stage(z_nodes, m, srefs):
        """MCD + branch_slelect + reconstruct for all `m` nodes of one level."""
        (taps, bw1, bb1, bw2, bb2, rw1, rb1, rw2, rb2) = srefs
        nimf = m * K_IMP
        imfs = mcd(z_nodes, taps, m)                           # (n, nimf*L)

        # branch_slelect: Linear(L,64) -> BN2d(folded) -> LeakyReLU -> Linear(64,2)
        # (block-diagonal over all IMFs of the level; logits packed [l0..., l1...]).
        h = leaky(dot(imfs, bw1[...]) + bb1[...])              # (n, nimf*64)
        logits = dot(h, bw2[...]) + bb2[...]                   # (n, 2*nimf)
        # gumbel_softmax(hard=False) without noise == softmax over 2 == sigmoid(l0-l1).
        p0 = jax.nn.sigmoid(logits[:, :nimf] - logits[:, nimf:])
        p1 = 1.0 - p0

        # Per-node weighted sums over the K_IMP IMFs -> [left, right] per node.
        outs = []
        for node in range(m):
            xl = None
            xr = None
            for k in range(K_IMP):
                j = node * K_IMP + k
                seg = imfs[:, j * L:(j + 1) * L]
                cl = seg * p0[:, j:j + 1]
                cr = seg * p1[:, j:j + 1]
                xl = cl if xl is None else xl + cl
                xr = cr if xr is None else xr + cr
            outs.append(xl)
            outs.append(xr)
        r_in = jnp.concatenate(outs, axis=1)                   # (n, 2m*L)

        # reconstruct_proj_{left,right}: Linear -> BN(folded) -> LeakyReLU ->
        # Dropout(identity) -> Linear -> BN(folded) -> LeakyReLU  (block-diag).
        hr = leaky(dot(r_in, rw1[...]) + rb1[...])
        return leaky(dot(hr, rw2[...]) + rb2[...])             # (n, 2m*L)

    # ----- tree, breadth-first: root (1 node) -> level-1 (2 nodes) -> leaves (4 nodes)
    z = x_ref[...]                                             # (n, L)
    for s in range(TOTAL_LEVEL):
        z = nonleaf_stage(z, 2 ** s, stage_refs[s])
    imfs = mcd(z, leaf_taps_ref, 2 ** TOTAL_LEVEL)             # (n, K_TOTAL*L) = (n, 128)

    # ----- forecast head (all IMFs at once, block-diagonal MLPs)
    h = leaky(dot(imfs, fc1_w[...]) + fc1_b[...])              # (n, K_TOTAL*H)
    y = dot(h, fc2_w[...]) + fc2_b[...]                        # (n, K_TOTAL*L)

    # SEBlock(mode='avg'): squeeze(mean over L) folded into se_w1; gate expansion
    # (replicate per-IMF gate over its L lanes) folded into se_w2 / se_b2.
    # TODO(synk): SEBlock source not provided; standard channel-wise SE over K assumed.
    se_h = jnp.maximum(dot(y, se_w1[...]) + se_b1[...], 0.0)   # (n, KR)
    gate = jax.nn.sigmoid(dot(se_h, se_w2[...]) + se_b2[...])  # (n, K_TOTAL*L)

    # gate-apply + sum over K + forecast_fc folded into one lane-replicated matmul.
    o_ref[...] = dot(y * gate, wout[...]) + bout[...]          # (n, OUTPUT_LEN)


# ------------------------------ wrapper ------------------------------
def _zero_map(ndim):
    return lambda: (0,) * ndim


@jax.jit
def dpad_se_forward(params, x):
    """x: (B, input_len, input_dim) -> (B, output_len, input_dim); RIN=0 (default)."""
    b, l, d = x.shape
    x2 = jnp.transpose(x, (0, 2, 1)).reshape(b * d, l).astype(jnp.float32)

    args = [x2]
    for st in params["stages"]:
        args += [st["taps"], st["bs_w1"], st["bs_b1"], st["bs_w2"], st["bs_b2"],
                 st["rp_w1"], st["rp_b1"], st["rp_w2"], st["rp_b2"]]
    args.append(params["leaf_taps"])
    args += [params["fc1_w"], params["fc1_b"], params["fc2_w"], params["fc2_b"],
             params["se_w1"], params["se_b1"], params["se_w2"], params["se_b2"],
             params["wout"], params["bout"]]

    in_specs = [pl.BlockSpec(a.shape, _zero_map(a.ndim)) for a in args]

    out = pl.pallas_call(
        _dpad_kernel,
        out_shape=jax.ShapeDtypeStruct((b * d, OUTPUT_LEN), jnp.float32),
        in_specs=in_specs,
        out_specs=pl.BlockSpec((b * d, OUTPUT_LEN), _zero_map(2)),
    )(*args)

    return jnp.transpose(out.reshape(b, d, OUTPUT_LEN), (0, 2, 1))


# --------------------------- parameter construction -------------------------
def _block_diag(blocks):
    r = sum(b.shape[0] for b in blocks)
    c = sum(b.shape[1] for b in blocks)
    out = jnp.zeros((r, c), jnp.float32)
    i = j = 0
    for b in blocks:
        out = out.at[i:i + b.shape[0], j:j + b.shape[1]].set(b)
        i += b.shape[0]
        j += b.shape[1]
    return out


def init_params(key):
    """Per-level lane-packed parameters; BN eval-scale folded into adjacent Linears."""
    L, H = INPUT_LEN, ENC_HIDDEN
    cnt = [0]

    def uni(shape, fan_in):
        cnt[0] += 1
        k = jax.random.fold_in(key, cnt[0])
        bound = 1.0 / math.sqrt(fan_in)
        return jax.random.uniform(k, shape, jnp.float32, -bound, bound)

    def mcd_taps(m):
        rows = [[], [], [], []]
        for _node in range(m):
            w = uni((K_IMP, 3), 3)            # Conv2d(1, K_IMP, (1,3)) weights
            b = uni((K_IMP,), 3)
            rows[0].append(jnp.repeat(w[:, 0], L))   # prev tap, per IMF segment
            rows[1].append(jnp.repeat(w[:, 1], L))   # mid tap
            rows[2].append(jnp.repeat(w[:, 2], L))   # next tap
            rows[3].append(jnp.repeat(b, L))         # bias
        return jnp.stack([jnp.concatenate(r) for r in rows], axis=0)   # (4, m*K*L)

    stages = []
    for s in range(TOTAL_LEVEL):              # s=0: root (m=1), s=1: m=2
        m = 2 ** s
        nimf = m * K_IMP

        taps = mcd_taps(m)

        # branch_slelect (per node, shared across that node's K_IMP IMFs);
        # BN2d eval-scale folded into the first Linear.
        bs_w1_blocks, bs_b1_parts = [], []
        bs_w2 = jnp.zeros((nimf * 64, 2 * nimf), jnp.float32)
        bs_b2 = jnp.zeros((2 * nimf,), jnp.float32)
        for node in range(m):
            w1 = uni((L, 64), L) * BN_SCALE
            b1 = uni((64,), L) * BN_SCALE
            w2 = uni((64, 2), 64)
            b2 = uni((2,), 64)
            for k in range(K_IMP):
                j = node * K_IMP + k
                bs_w1_blocks.append(w1)
                bs_b1_parts.append(b1)
                bs_w2 = bs_w2.at[j * 64:(j + 1) * 64, j].set(w2[:, 0])
                bs_w2 = bs_w2.at[j * 64:(j + 1) * 64, nimf + j].set(w2[:, 1])
                bs_b2 = bs_b2.at[j].set(b2[0]).at[nimf + j].set(b2[1])

        # reconstruct_proj_{left,right} (order [left, right] per node);
        # BN1d eval-scale folded into both Linears.
        rp_w1_blocks, rp_b1_parts, rp_w2_blocks, rp_b2_parts = [], [], [], []
        for _node in range(m):
            for _side in range(2):
                rp_w1_blocks.append(uni((L, H), L) * BN_SCALE)
                rp_b1_parts.append(uni((H,), L) * BN_SCALE)
                rp_w2_blocks.append(uni((H, L), H) * BN_SCALE)
                rp_b2_parts.append(uni((L,), H) * BN_SCALE)

        stages.append(dict(
            taps=taps,
            bs_w1=_block_diag(bs_w1_blocks),
            bs_b1=jnp.concatenate(bs_b1_parts)[None, :],
            bs_w2=bs_w2,
            bs_b2=bs_b2[None, :],
            rp_w1=_block_diag(rp_w1_blocks),
            rp_b1=jnp.concatenate(rp_b1_parts)[None, :],
            rp_w2=_block_diag(rp_w2_blocks),
            rp_b2=jnp.concatenate(rp_b2_parts)[None, :],
        ))

    leaf_taps = mcd_taps(2 ** TOTAL_LEVEL)                     # (4, K_TOTAL*L)

    # forecast_proj1 / forecast_proj2 (per-IMF MLPs, block-diagonal).
    fc1_blocks, fc1_b_parts, fc2_blocks, fc2_b_parts = [], [], [], []
    for _i in range(K_TOTAL):
        fc1_blocks.append(uni((L, H), L))
        fc1_b_parts.append(uni((H,), L))
        fc2_blocks.append(uni((H, L), H))
        fc2_b_parts.append(uni((L,), H))
    fc1_w = _block_diag(fc1_blocks)                            # (K*L, K*H)
    fc1_b = jnp.concatenate(fc1_b_parts)[None, :]
    fc2_w = _block_diag(fc2_blocks)                            # (K*H, K*L)
    fc2_b = jnp.concatenate(fc2_b_parts)[None, :]

    # SEBlock excitation FCs with the avg-pool (over L) folded into se_w1 and the
    # per-IMF gate expansion (replicate over L lanes) folded into se_w2 / se_b2.
    se_w1 = uni((K_TOTAL, KR), K_TOTAL)
    se_b1 = uni((KR,), K_TOTAL)
    se_w2 = uni((KR, K_TOTAL), KR)
    se_b2 = uni((K_TOTAL,), KR)
    pool = jnp.repeat(jnp.eye(K_TOTAL, dtype=jnp.float32), L, axis=0) / L   # (K*L, K)
    expand = jnp.repeat(jnp.eye(K_TOTAL, dtype=jnp.float32), L, axis=1)     # (K, K*L)
    se_w1_eff = pool @ se_w1                                   # (K*L, KR)
    se_w2_eff = se_w2 @ expand                                 # (KR, K*L)
    se_b2_eff = se_b2[None, :] @ expand                        # (1, K*L)

    # forecast_fc folded into a lane-replicated (K*L, OUT) weight (sum over K is
    # absorbed by the matmul after per-lane gating).
    fcout_w = uni((L, OUTPUT_LEN), L)
    fcout_b = uni((OUTPUT_LEN,), L)
    wout = jnp.tile(fcout_w, (K_TOTAL, 1))                     # (K*L, OUT)
    bout = fcout_b[None, :]

    return dict(stages=stages, leaf_taps=leaf_taps,
                fc1_w=fc1_w, fc1_b=fc1_b, fc2_w=fc2_w, fc2_b=fc2_b,
                se_w1=se_w1_eff, se_b1=se_b1[None, :],
                se_w2=se_w2_eff, se_b2=se_b2_eff,
                wout=wout, bout=bout)


# ------------------------------------ main -----------------------------------
if __name__ == "__main__":
    key = jax.random.PRNGKey(0)
    k_params, k_x = jax.random.split(key)
    params = init_params(k_params)
    x = jax.random.normal(k_x, (BATCH, INPUT_LEN, INPUT_DIM), dtype=jnp.float32)

    out = jax.block_until_ready(dpad_se_forward(params, x))
    assert out.shape == (BATCH, OUTPUT_LEN, INPUT_DIM), out.shape
    assert bool(jnp.all(jnp.isfinite(out)))
    print("KERNEL_OK")
</pallas_src>

<mosaic_0001>
module attributes {stable_mosaic.version = 11 : i64} {
  func.func @_dpad_kernel(%arg0: memref<8x16xf32, #tpu.memory_space<vmem>>, %arg1: memref<4x32xf32, #tpu.memory_space<vmem>>, %arg2: memref<32x128xf32, #tpu.memory_space<vmem>>, %arg3: memref<1x128xf32, #tpu.memory_space<vmem>>, %arg4: memref<128x4xf32, #tpu.memory_space<vmem>>, %arg5: memref<1x4xf32, #tpu.memory_space<vmem>>, %arg6: memref<32x64xf32, #tpu.memory_space<vmem>>, %arg7: memref<1x64xf32, #tpu.memory_space<vmem>>, %arg8: memref<64x32xf32, #tpu.memory_space<vmem>>, %arg9: memref<1x32xf32, #tpu.memory_space<vmem>>, %arg10: memref<4x64xf32, #tpu.memory_space<vmem>>, %arg11: memref<64x256xf32, #tpu.memory_space<vmem>>, %arg12: memref<1x256xf32, #tpu.memory_space<vmem>>, %arg13: memref<256x8xf32, #tpu.memory_space<vmem>>, %arg14: memref<1x8xf32, #tpu.memory_space<vmem>>, %arg15: memref<64x128xf32, #tpu.memory_space<vmem>>, %arg16: memref<1x128xf32, #tpu.memory_space<vmem>>, %arg17: memref<128x64xf32, #tpu.memory_space<vmem>>, %arg18: memref<1x64xf32, #tpu.memory_space<vmem>>, %arg19: memref<4x128xf32, #tpu.memory_space<vmem>>, %arg20: memref<128x256xf32, #tpu.memory_space<vmem>>, %arg21: memref<1x256xf32, #tpu.memory_space<vmem>>, %arg22: memref<256x128xf32, #tpu.memory_space<vmem>>, %arg23: memref<1x128xf32, #tpu.memory_space<vmem>>, %arg24: memref<128x4xf32, #tpu.memory_space<vmem>>, %arg25: memref<1x4xf32, #tpu.memory_space<vmem>>, %arg26: memref<4x128xf32, #tpu.memory_space<vmem>>, %arg27: memref<1x128xf32, #tpu.memory_space<vmem>>, %arg28: memref<128x8xf32, #tpu.memory_space<vmem>>, %arg29: memref<1x8xf32, #tpu.memory_space<vmem>>, %arg30: memref<8x8xf32, #tpu.memory_space<vmem>>) attributes {dimension_semantics = [], scalar_prefetch = 0 : i64, scratch_operands = 0 : i64, tpu.core_type = #tpu.core_type<tc>} {
    %c0 = arith.constant 0 : index
    %c0_0 = arith.constant 0 : index
    %0 = vector.load %arg0[%c0, %c0_0] : memref<8x16xf32, #tpu.memory_space<vmem>>, vector<8x16xf32>
    %1 = tpu.concatenate %0, %0 in 1 : vector<8x16xf32>, vector<8x16xf32> -> vector<8x32xf32>
    %2 = tpu.iota {dimensions = array<i32: 1>} : vector<8x32xi32>
    %c16_i32 = arith.constant 16 : i32
    %c0_i32 = arith.constant 0 : i32
    %3 = arith.cmpi eq, %c16_i32, %c0_i32 : i32
    %c1_i32 = arith.constant 1 : i32
    %4 = arith.select %3, %c1_i32, %c16_i32 : i32
    %5 = vector.broadcast %4 : i32 to vector<8x32xi32>
    %6 = arith.remsi %2, %5 : vector<8x32xi32>
    %c0_i32_1 = arith.constant 0 : i32
    %7 = vector.broadcast %c0_i32_1 : i32 to vector<8x32xi32>
    %8 = arith.cmpi ne, %6, %7 : vector<8x32xi32>
    %c0_i32_2 = arith.constant 0 : i32
    %9 = vector.broadcast %c0_i32_2 : i32 to vector<8x32xi32>
    %10 = arith.cmpi slt, %6, %9 : vector<8x32xi32>
    %c0_i32_3 = arith.constant 0 : i32
    %11 = arith.cmpi slt, %4, %c0_i32_3 : i32
    %12 = vector.broadcast %11 : i1 to vector<8x32xi1>
    %13 = vector.broadcast %12 : vector<8x32xi1> to vector<8x32xi1>
    %14 = arith.xori %10, %13 : vector<8x32xi1>
    %15 = arith.andi %14, %8 : vector<8x32xi1>
    %16 = vector.broadcast %4 : i32 to vector<8x32xi32>
    %17 = arith.addi %6, %16 : vector<8x32xi32>
    %18 = arith.select %15, %17, %6 : vector<8x32xi1>, vector<8x32xi32>
    %c1_i32_4 = arith.constant 1 : i32
    %19 = vector.broadcast %c1_i32_4 : i32 to vector<8x32xi32>
    %20 = arith.cmpi sge, %18, %19 : vector<8x32xi32>
    %c1_i32_5 = arith.constant 1 : i32
    %21 = tpu.dynamic_rotate %1 by %c1_i32_5 dim 1 : vector<8x32xf32>, i32 -> vector<8x32xf32>
    %cst = arith.constant 0.000000e+00 : f32
    %22 = vector.broadcast %cst : f32 to vector<8x32xf32>
    %23 = arith.select %20, %21, %22 : vector<8x32xi1>, vector<8x32xf32>
    %c14_i32 = arith.constant 14 : i32
    %24 = vector.broadcast %c14_i32 : i32 to vector<8x32xi32>
    %25 = arith.cmpi sle, %18, %24 : vector<8x32xi32>
    %c31_i32 = arith.constant 31 : i32
    %26 = tpu.dynamic_rotate %1 by %c31_i32 dim 1 : vector<8x32xf32>, i32 -> vector<8x32xf32>
    %cst_6 = arith.constant 0.000000e+00 : f32
    %27 = vector.broadcast %cst_6 : f32 to vector<8x32xf32>
    %28 = arith.select %25, %26, %27 : vector<8x32xi1>, vector<8x32xf32>
    %c0_7 = arith.constant 0 : index
    %c0_8 = arith.constant 0 : index
    %29 = vector.load %arg1[%c0_7, %c0_8] : memref<4x32xf32, #tpu.memory_space<vmem>>, vector<4x32xf32>
    %30 = vector.extract_strided_slice %29 {offsets = [0, 0], sizes = [1, 32], strides = [1, 1]} : vector<4x32xf32> to vector<1x32xf32>
    %31 = vector.broadcast %30 : vector<1x32xf32> to vector<8x32xf32>
    %32 = arith.mulf %31, %23 : vector<8x32xf32>
    %33 = vector.extract_strided_slice %29 {offsets = [1, 0], sizes = [1, 32], strides = [1, 1]} : vector<4x32xf32> to vector<1x32xf32>
    %34 = vector.broadcast %33 : vector<1x32xf32> to vector<8x32xf32>
    %35 = arith.mulf %34, %1 : vector<8x32xf32>
    %36 = arith.addf %32, %35 : vector<8x32xf32>
    %37 = vector.extract_strided_slice %29 {offsets = [2, 0], sizes = [1, 32], strides = [1, 1]} : vector<4x32xf32> to vector<1x32xf32>
    %38 = vector.broadcast %37 : vector<1x32xf32> to vector<8x32xf32>
    %39 = arith.mulf %38, %28 : vector<8x32xf32>
    %40 = arith.addf %36, %39 : vector<8x32xf32>
    %41 = vector.extract_strided_slice %29 {offsets = [3, 0], sizes = [1, 32], strides = [1, 1]} : vector<4x32xf32> to vector<1x32xf32>
    %42 = vector.broadcast %41 : vector<1x32xf32> to vector<8x32xf32>
    %43 = arith.addf %40, %42 : vector<8x32xf32>
    %c0_9 = arith.constant 0 : index
    %c0_10 = arith.constant 0 : index
    %44 = vector.load %arg2[%c0_9, %c0_10] : memref<32x128xf32, #tpu.memory_space<vmem>>, vector<32x128xf32>
    %cst_11 = arith.constant dense<0.000000e+00> : vector<8x128xf32>
    %45 = tpu.matmul %43, %44, %cst_11 {dimension_numbers = #tpu.dot_dimension_numbers<[1], [0], [0], [1], [0, 0, 1, 1], [], []>} : vector<8x32xf32>, vector<32x128xf32>, vector<8x128xf32> -> vector<8x128xf32>
    %c0_12 = arith.constant 0 : index
    %c0_13 = arith.constant 0 : index
    %46 = vector.load %arg3[%c0_12, %c0_13] : memref<1x128xf32, #tpu.memory_space<vmem>>, vector<1x128xf32>
    %47 = vector.broadcast %46 : vector<1x128xf32> to vector<8x128xf32>
    %48 = arith.addf %45, %47 : vector<8x128xf32>
    %cst_14 = arith.constant 0.000000e+00 : f32
    %49 = vector.broadcast %cst_14 : f32 to vector<8x128xf32>
    %50 = arith.cmpf oge, %48, %49 : vector<8x128xf32>
    %cst_15 = arith.constant 0.00999999977 : f32
    %51 = vector.broadcast %cst_15 : f32 to vector<8x128xf32>
    %52 = arith.mulf %51, %48 : vector<8x128xf32>
    %53 = arith.select %50, %48, %52 : vector<8x128xi1>, vector<8x128xf32>
    %c0_16 = arith.constant 0 : index
    %c0_17 = arith.constant 0 : index
    %54 = vector.load %arg4[%c0_16, %c0_17] : memref<128x4xf32, #tpu.memory_space<vmem>>, vector<128x4xf32>
    %cst_18 = arith.constant dense<0.000000e+00> : vector<8x4xf32>
    %55 = tpu.matmul %53, %54, %cst_18 {dimension_numbers = #tpu.dot_dimension_numbers<[1], [0], [0], [1], [0, 0, 1, 1], [], []>} : vector<8x128xf32>, vector<128x4xf32>, vector<8x4xf32> -> vector<8x4xf32>
    %c0_19 = arith.constant 0 : index
    %c0_20 = arith.constant 0 : index
    %56 = vector.load %arg5[%c0_19, %c0_20] : memref<1x4xf32, #tpu.memory_space<vmem>>, vector<1x4xf32>
    %57 = vector.broadcast %56 : vector<1x4xf32> to vector<8x4xf32>
    %58 = arith.addf %55, %57 : vector<8x4xf32>
    %59 = vector.extract_strided_slice %58 {offsets = [0, 0], sizes = [8, 2], strides = [1, 1]} : vector<8x4xf32> to vector<8x2xf32>
    %60 = vector.extract_strided_slice %58 {offsets = [0, 2], sizes = [8, 2], strides = [1, 1]} : vector<8x4xf32> to vector<8x2xf32>
    %61 = arith.subf %59, %60 : vector<8x2xf32>
    %62 = arith.negf %61 : vector<8x2xf32>
    %63 = math.exp %62 : vector<8x2xf32>
    %cst_21 = arith.constant 1.000000e+00 : f32
    %64 = vector.broadcast %cst_21 : f32 to vector<8x2xf32>
    %65 = arith.addf %64, %63 : vector<8x2xf32>
    %66 = arith.divf %64, %65 : vector<8x2xf32>
    %cst_22 = arith.constant 1.000000e+00 : f32
    %67 = vector.broadcast %cst_22 : f32 to vector<8x2xf32>
    %68 = arith.subf %67, %66 : vector<8x2xf32>
    %69 = vector.extract_strided_slice %43 {offsets = [0, 0], sizes = [8, 16], strides = [1, 1]} : vector<8x32xf32> to vector<8x16xf32>
    %70 = vector.extract_strided_slice %66 {offsets = [0, 0], sizes = [8, 1], strides = [1, 1]} : vector<8x2xf32> to vector<8x1xf32>
    %71 = vector.broadcast %70 : vector<8x1xf32> to vector<8x16xf32>
    %72 = arith.mulf %69, %71 : vector<8x16xf32>
    %73 = vector.extract_strided_slice %68 {offsets = [0, 0], sizes = [8, 1], strides = [1, 1]} : vector<8x2xf32> to vector<8x1xf32>
    %74 = vector.broadcast %73 : vector<8x1xf32> to vector<8x16xf32>
    %75 = arith.mulf %69, %74 : vector<8x16xf32>
    %76 = vector.extract_strided_slice %43 {offsets = [0, 16], sizes = [8, 16], strides = [1, 1]} : vector<8x32xf32> to vector<8x16xf32>
    %77 = vector.extract_strided_slice %66 {offsets = [0, 1], sizes = [8, 1], strides = [1, 1]} : vector<8x2xf32> to vector<8x1xf32>
    %78 = vector.broadcast %77 : vector<8x1xf32> to vector<8x16xf32>
    %79 = arith.mulf %76, %78 : vector<8x16xf32>
    %80 = vector.extract_strided_slice %68 {offsets = [0, 1], sizes = [8, 1], strides = [1, 1]} : vector<8x2xf32> to vector<8x1xf32>
    %81 = vector.broadcast %80 : vector<8x1xf32> to vector<8x16xf32>
    %82 = arith.mulf %76, %81 : vector<8x16xf32>
    %83 = arith.addf %72, %79 : vector<8x16xf32>
    %84 = arith.addf %75, %82 : vector<8x16xf32>
    %85 = tpu.concatenate %83, %84 in 1 : vector<8x16xf32>, vector<8x16xf32> -> vector<8x32xf32>
    %c0_23 = arith.constant 0 : index
    %c0_24 = arith.constant 0 : index
    %86 = vector.load %arg6[%c0_23, %c0_24] : memref<32x64xf32, #tpu.memory_space<vmem>>, vector<32x64xf32>
    %cst_25 = arith.constant dense<0.000000e+00> : vector<8x64xf32>
    %87 = tpu.matmul %85, %86, %cst_25 {dimension_numbers = #tpu.dot_dimension_numbers<[1], [0], [0], [1], [0, 0, 1, 1], [], []>} : vector<8x32xf32>, vector<32x64xf32>, vector<8x64xf32> -> vector<8x64xf32>
    %c0_26 = arith.constant 0 : index
    %c0_27 = arith.constant 0 : index
    %88 = vector.load %arg7[%c0_26, %c0_27] : memref<1x64xf32, #tpu.memory_space<vmem>>, vector<1x64xf32>
    %89 = vector.broadcast %88 : vector<1x64xf32> to vector<8x64xf32>
    %90 = arith.addf %87, %89 : vector<8x64xf32>
    %cst_28 = arith.constant 0.000000e+00 : f32
    %91 = vector.broadcast %cst_28 : f32 to vector<8x64xf32>
    %92 = arith.cmpf oge, %90, %91 : vector<8x64xf32>
    %cst_29 = arith.constant 0.00999999977 : f32
    %93 = vector.broadcast %cst_29 : f32 to vector<8x64xf32>
    %94 = arith.mulf %93, %90 : vector<8x64xf32>
    %95 = arith.select %92, %90, %94 : vector<8x64xi1>, vector<8x64xf32>
    %c0_30 = arith.constant 0 : index
    %c0_31 = arith.constant 0 : index
    %96 = vector.load %arg8[%c0_30, %c0_31] : memref<64x32xf32, #tpu.memory_space<vmem>>, vector<64x32xf32>
    %cst_32 = arith.constant dense<0.000000e+00> : vector<8x32xf32>
    %97 = tpu.matmul %95, %96, %cst_32 {dimension_numbers = #tpu.dot_dimension_numbers<[1], [0], [0], [1], [0, 0, 1, 1], [], []>} : vector<8x64xf32>, vector<64x32xf32>, vector<8x32xf32> -> vector<8x32xf32>
    %c0_33 = arith.constant 0 : index
    %c0_34 = arith.constant 0 : index
    %98 = vector.load %arg9[%c0_33, %c0_34] : memref<1x32xf32, #tpu.memory_space<vmem>>, vector<1x32xf32>
    %99 = vector.broadcast %98 : vector<1x32xf32> to vector<8x32xf32>
    %100 = arith.addf %97, %99 : vector<8x32xf32>
    %cst_35 = arith.constant 0.000000e+00 : f32
    %101 = vector.broadcast %cst_35 : f32 to vector<8x32xf32>
    %102 = arith.cmpf oge, %100, %101 : vector<8x32xf32>
    %cst_36 = arith.constant 0.00999999977 : f32
    %103 = vector.broadcast %cst_36 : f32 to vector<8x32xf32>
    %104 = arith.mulf %103, %100 : vector<8x32xf32>
    %105 = arith.select %102, %100, %104 : vector<8x32xi1>, vector<8x32xf32>
    %106 = vector.extract_strided_slice %105 {offsets = [0, 0], sizes = [8, 16], strides = [1, 1]} : vector<8x32xf32> to vector<8x16xf32>
    %107 = vector.extract_strided_slice %105 {offsets = [0, 16], sizes = [8, 16], strides = [1, 1]} : vector<8x32xf32> to vector<8x16xf32>
    %108 = tpu.concatenate %106, %106, %107, %107 in 1 : vector<8x16xf32>, vector<8x16xf32>, vector<8x16xf32>, vector<8x16xf32> -> vector<8x64xf32>
    %109 = tpu.iota {dimensions = array<i32: 1>} : vector<8x64xi32>
    %c16_i32_37 = arith.constant 16 : i32
    %c0_i32_38 = arith.constant 0 : i32
    %110 = arith.cmpi eq, %c16_i32_37, %c0_i32_38 : i32
    %c1_i32_39 = arith.constant 1 : i32
    %111 = arith.select %110, %c1_i32_39, %c16_i32_37 : i32
    %112 = vector.broadcast %111 : i32 to vector<8x64xi32>
    %113 = arith.remsi %109, %112 : vector<8x64xi32>
    %c0_i32_40 = arith.constant 0 : i32
    %114 = vector.broadcast %c0_i32_40 : i32 to vector<8x64xi32>
    %115 = arith.cmpi ne, %113, %114 : vector<8x64xi32>
    %c0_i32_41 = arith.constant 0 : i32
    %116 = vector.broadcast %c0_i32_41 : i32 to vector<8x64xi32>
    %117 = arith.cmpi slt, %113, %116 : vector<8x64xi32>
    %c0_i32_42 = arith.constant 0 : i32
    %118 = arith.cmpi slt, %111, %c0_i32_42 : i32
    %119 = vector.broadcast %118 : i1 to vector<8x64xi1>
    %120 = vector.broadcast %119 : vector<8x64xi1> to vector<8x64xi1>
    %121 = arith.xori %117, %120 : vector<8x64xi1>
    %122 = arith.andi %121, %115 : vector<8x64xi1>
    %123 = vector.broadcast %111 : i32 to vector<8x64xi32>
    %124 = arith.addi %113, %123 : vector<8x64xi32>
    %125 = arith.select %122, %124, %113 : vector<8x64xi1>, vector<8x64xi32>
    %c1_i32_43 = arith.constant 1 : i32
    %126 = vector.broadcast %c1_i32_43 : i32 to vector<8x64xi32>
    %127 = arith.cmpi sge, %125, %126 : vector<8x64xi32>
    %c1_i32_44 = arith.constant 1 : i32
    %128 = tpu.dynamic_rotate %108 by %c1_i32_44 dim 1 : vector<8x64xf32>, i32 -> vector<8x64xf32>
    %cst_45 = arith.constant 0.000000e+00 : f32
    %129 = vector.broadcast %cst_45 : f32 to vector<8x64xf32>
    %130 = arith.select %127, %128, %129 : vector<8x64xi1>, vector<8x64xf32>
    %c14_i32_46 = arith.constant 14 : i32
    %131 = vector.broadcast %c14_i32_46 : i32 to vector<8x64xi32>
    %132 = arith.cmpi sle, %125, %131 : vector<8x64xi32>
    %c63_i32 = arith.constant 63 : i32
    %133 = tpu.dynamic_rotate %108 by %c63_i32 dim 1 : vector<8x64xf32>, i32 -> vector<8x64xf32>
    %cst_47 = arith.constant 0.000000e+00 : f32
    %134 = vector.broadcast %cst_47 : f32 to vector<8x64xf32>
    %135 = arith.select %132, %133, %134 : vector<8x64xi1>, vector<8x64xf32>
    %c0_48 = arith.constant 0 : index
    %c0_49 = arith.constant 0 : index
    %136 = vector.load %arg10[%c0_48, %c0_49] : memref<4x64xf32, #tpu.memory_space<vmem>>, vector<4x64xf32>
    %137 = vector.extract_strided_slice %136 {offsets = [0, 0], sizes = [1, 64], strides = [1, 1]} : vector<4x64xf32> to vector<1x64xf32>
    %138 = vector.broadcast %137 : vector<1x64xf32> to vector<8x64xf32>
    %139 = arith.mulf %138, %130 : vector<8x64xf32>
    %140 = vector.extract_strided_slice %136 {offsets = [1, 0], sizes = [1, 64], strides = [1, 1]} : vector<4x64xf32> to vector<1x64xf32>
    %141 = vector.broadcast %140 : vector<1x64xf32> to vector<8x64xf32>
    %142 = arith.mulf %141, %108 : vector<8x64xf32>
    %143 = arith.addf %139, %142 : vector<8x64xf32>
    %144 = vector.extract_strided_slice %136 {offsets = [2, 0], sizes = [1, 64], strides = [1, 1]} : vector<4x64xf32> to vector<1x64xf32>
    %145 = vector.broadcast %144 : vector<1x64xf32> to vector<8x64xf32>
    %146 = arith.mulf %145, %135 : vector<8x64xf32>
    %147 = arith.addf %143, %146 : vector<8x64xf32>
    %148 = vector.extract_strided_slice %136 {offsets = [3, 0], sizes = [1, 64], strides = [1, 1]} : vector<4x64xf32> to vector<1x64xf32>
    %149 = vector.broadcast %148 : vector<1x64xf32> to vector<8x64xf32>
    %150 = arith.addf %147, %149 : vector<8x64xf32>
    %c0_50 = arith.constant 0 : index
    %c0_51 = arith.constant 0 : index
    %151 = vector.load %arg11[%c0_50, %c0_51] : memref<64x256xf32, #tpu.memory_space<vmem>>, vector<64x256xf32>
    %cst_52 = arith.constant dense<0.000000e+00> : vector<8x256xf32>
    %152 = tpu.matmul %150, %151, %cst_52 {dimension_numbers = #tpu.dot_dimension_numbers<[1], [0], [0], [1], [0, 0, 1, 1], [], []>} : vector<8x64xf32>, vector<64x256xf32>, vector<8x256xf32> -> vector<8x256xf32>
    %c0_53 = arith.constant 0 : index
    %c0_54 = arith.constant 0 : index
    %153 = vector.load %arg12[%c0_53, %c0_54] : memref<1x256xf32, #tpu.memory_space<vmem>>, vector<1x256xf32>
    %154 = vector.broadcast %153 : vector<1x256xf32> to vector<8x256xf32>
    %155 = arith.addf %152, %154 : vector<8x256xf32>
    %cst_55 = arith.constant 0.000000e+00 : f32
    %156 = vector.broadcast %cst_55 : f32 to vector<8x256xf32>
    %157 = arith.cmpf oge, %155, %156 : vector<8x256xf32>
    %cst_56 = arith.constant 0.00999999977 : f32
    %158 = vector.broadcast %cst_56 : f32 to vector<8x256xf32>
    %159 = arith.mulf %158, %155 : vector<8x256xf32>
    %160 = arith.select %157, %155, %159 : vector<8x256xi1>, vector<8x256xf32>
    %c0_57 = arith.constant 0 : index
    %c0_58 = arith.constant 0 : index
    %161 = vector.load %arg13[%c0_57, %c0_58] : memref<256x8xf32, #tpu.memory_space<vmem>>, vector<256x8xf32>
    %cst_59 = arith.constant dense<0.000000e+00> : vector<8x8xf32>
    %162 = tpu.matmul %160, %161, %cst_59 {dimension_numbers = #tpu.dot_dimension_numbers<[1], [0], [0], [1], [0, 0, 1, 1], [], []>} : vector<8x256xf32>, vector<256x8xf32>, vector<8x8xf32> -> vector<8x8xf32>
    %c0_60 = arith.constant 0 : index
    %c0_61 = arith.constant 0 : index
    %163 = vector.load %arg14[%c0_60, %c0_61] : memref<1x8xf32, #tpu.memory_space<vmem>>, vector<1x8xf32>
    %164 = vector.broadcast %163 : vector<1x8xf32> to vector<8x8xf32>
    %165 = arith.addf %162, %164 : vector<8x8xf32>
    %166 = vector.extract_strided_slice %165 {offsets = [0, 0], sizes = [8, 4], strides = [1, 1]} : vector<8x8xf32> to vector<8x4xf32>
    %167 = vector.extract_strided_slice %165 {offsets = [0, 4], sizes = [8, 4], strides = [1, 1]} : vector<8x8xf32> to vector<8x4xf32>
    %168 = arith.subf %166, %167 : vector<8x4xf32>
    %169 = arith.negf %168 : vector<8x4xf32>
    %170 = math.exp %169 : vector<8x4xf32>
    %cst_62 = arith.constant 1.000000e+00 : f32
    %171 = vector.broadcast %cst_62 : f32 to vector<8x4xf32>
    %172 = arith.addf %171, %170 : vector<8x4xf32>
    %173 = arith.divf %171, %172 : vector<8x4xf32>
    %cst_63 = arith.constant 1.000000e+00 : f32
    %174 = vector.broadcast %cst_63 : f32 to vector<8x4xf32>
    %175 = arith.subf %174, %173 : vector<8x4xf32>
    %176 = vector.extract_strided_slice %150 {offsets = [0, 0], sizes = [8, 16], strides = [1, 1]} : vector<8x64xf32> to vector<8x16xf32>
    %177 = vector.extract_strided_slice %173 {offsets = [0, 0], sizes = [8, 1], strides = [1, 1]} : vector<8x4xf32> to vector<8x1xf32>
    %178 = vector.broadcast %177 : vector<8x1xf32> to vector<8x16xf32>
    %179 = arith.mulf %176, %178 : vector<8x16xf32>
    %180 = vector.extract_strided_slice %175 {offsets = [0, 0], sizes = [8, 1], strides = [1, 1]} : vector<8x4xf32> to vector<8x1xf32>
    %181 = vector.broadcast %180 : vector<8x1xf32> to vector<8x16xf32>
    %182 = arith.mulf %176, %181 : vector<8x16xf32>
    %183 = vector.extract_strided_slice %150 {offsets = [0, 16], sizes = [8, 16], strides = [1, 1]} : vector<8x64xf32> to vector<8x16xf32>
    %184 = vector.extract_strided_slice %173 {offsets = [0, 1], sizes = [8, 1], strides = [1, 1]} : vector<8x4xf32> to vector<8x1xf32>
    %185 = vector.broadcast %184 : vector<8x1xf32> to vector<8x16xf32>
    %186 = arith.mulf %183, %185 : vector<8x16xf32>
    %187 = vector.extract_strided_slice %175 {offsets = [0, 1], sizes = [8, 1], strides = [1, 1]} : vector<8x4xf32> to vector<8x1xf32>
    %188 = vector.broadcast %187 : vector<8x1xf32> to vector<8x16xf32>
    %189 = arith.mulf %183, %188 : vector<8x16xf32>
    %190 = arith.addf %179, %186 : vector<8x16xf32>
    %191 = arith.addf %182, %189 : vector<8x16xf32>
    %192 = vector.extract_strided_slice %150 {offsets = [0, 32], sizes = [8, 16], strides = [1, 1]} : vector<8x64xf32> to vector<8x16xf32>
    %193 = vector.extract_strided_slice %173 {offsets = [0, 2], sizes = [8, 1], strides = [1, 1]} : vector<8x4xf32> to vector<8x1xf32>
    %194 = vector.broadcast %193 : vector<8x1xf32> to vector<8x16xf32>
    %195 = arith.mulf %192, %194 : vector<8x16xf32>
    %196 = vector.extract_strided_slice %175 {offsets = [0, 2], sizes = [8, 1], strides = [1, 1]} : vector<8x4xf32> to vector<8x1xf32>
    %197 = vector.broadcast %196 : vector<8x1xf32> to vector<8x16xf32>
    %198 = arith.mulf %192, %197 : vector<8x16xf32>
    %199 = vector.extract_strided_slice %150 {offsets = [0, 48], sizes = [8, 16], strides = [1, 1]} : vector<8x64xf32> to vector<8x16xf32>
    %200 = vector.extract_strided_slice %173 {offsets = [0, 3], sizes = [8, 1], strides = [1, 1]} : vector<8x4xf32> to vector<8x1xf32>
    %201 = vector.broadcast %200 : vector<8x1xf32> to vector<8x16xf32>
    %202 = arith.mulf %199, %201 : vector<8x16xf32>
    %203 = vector.extract_strided_slice %175 {offsets = [0, 3], sizes = [8, 1], strides = [1, 1]} : vector<8x4xf32> to vector<8x1xf32>
    %204 = vector.broadcast %203 : vector<8x1xf32> to vector<8x16xf32>
    %205 = arith.mulf %199, %204 : vector<8x16xf32>
    %206 = arith.addf %195, %202 : vector<8x16xf32>
    %207 = arith.addf %198, %205 : vector<8x16xf32>
    %208 = tpu.concatenate %190, %191, %206, %207 in 1 : vector<8x16xf32>, vector<8x16xf32>, vector<8x16xf32>, vector<8x16xf32> -> vector<8x64xf32>
    %c0_64 = arith.constant 0 : index
    %c0_65 = arith.constant 0 : index
    %209 = vector.load %arg15[%c0_64, %c0_65] : memref<64x128xf32, #tpu.memory_space<vmem>>, vector<64x128xf32>
    %cst_66 = arith.constant dense<0.000000e+00> : vector<8x128xf32>
    %210 = tpu.matmul %208, %209, %cst_66 {dimension_numbers = #tpu.dot_dimension_numbers<[1], [0], [0], [1], [0, 0, 1, 1], [], []>} : vector<8x64xf32>, vector<64x128xf32>, vector<8x128xf32> -> vector<8x128xf32>
    %c0_67 = arith.constant 0 : index
    %c0_68 = arith.constant 0 : index
    %211 = vector.load %arg16[%c0_67, %c0_68] : memref<1x128xf32, #tpu.memory_space<vmem>>, vector<1x128xf32>
    %212 = vector.broadcast %211 : vector<1x128xf32> to vector<8x128xf32>
    %213 = arith.addf %210, %212 : vector<8x128xf32>
    %cst_69 = arith.constant 0.000000e+00 : f32
    %214 = vector.broadcast %cst_69 : f32 to vector<8x128xf32>
    %215 = arith.cmpf oge, %213, %214 : vector<8x128xf32>
    %cst_70 = arith.constant 0.00999999977 : f32
    %216 = vector.broadcast %cst_70 : f32 to vector<8x128xf32>
    %217 = arith.mulf %216, %213 : vector<8x128xf32>
    %218 = arith.select %215, %213, %217 : vector<8x128xi1>, vector<8x128xf32>
    %c0_71 = arith.constant 0 : index
    %c0_72 = arith.constant 0 : index
    %219 = vector.load %arg17[%c0_71, %c0_72] : memref<128x64xf32, #tpu.memory_space<vmem>>, vector<128x64xf32>
    %cst_73 = arith.constant dense<0.000000e+00> : vector<8x64xf32>
    %220 = tpu.matmul %218, %219, %cst_73 {dimension_numbers = #tpu.dot_dimension_numbers<[1], [0], [0], [1], [0, 0, 1, 1], [], []>} : vector<8x128xf32>, vector<128x64xf32>, vector<8x64xf32> -> vector<8x64xf32>
    %c0_74 = arith.constant 0 : index
    %c0_75 = arith.constant 0 : index
    %221 = vector.load %arg18[%c0_74, %c0_75] : memref<1x64xf32, #tpu.memory_space<vmem>>, vector<1x64xf32>
    %222 = vector.broadcast %221 : vector<1x64xf32> to vector<8x64xf32>
    %223 = arith.addf %220, %222 : vector<8x64xf32>
    %cst_76 = arith.constant 0.000000e+00 : f32
    %224 = vector.broadcast %cst_76 : f32 to vector<8x64xf32>
    %225 = arith.cmpf oge, %223, %224 : vector<8x64xf32>
    %cst_77 = arith.constant 0.00999999977 : f32
    %226 = vector.broadcast %cst_77 : f32 to vector<8x64xf32>
    %227 = arith.mulf %226, %223 : vector<8x64xf32>
    %228 = arith.select %225, %223, %227 : vector<8x64xi1>, vector<8x64xf32>
    %229 = vector.extract_strided_slice %228 {offsets = [0, 0], sizes = [8, 16], strides = [1, 1]} : vector<8x64xf32> to vector<8x16xf32>
    %230 = vector.extract_strided_slice %228 {offsets = [0, 16], sizes = [8, 16], strides = [1, 1]} : vector<8x64xf32> to vector<8x16xf32>
    %231 = vector.extract_strided_slice %228 {offsets = [0, 32], sizes = [8, 16], strides = [1, 1]} : vector<8x64xf32> to vector<8x16xf32>
    %232 = vector.extract_strided_slice %228 {offsets = [0, 48], sizes = [8, 16], strides = [1, 1]} : vector<8x64xf32> to vector<8x16xf32>
    %233 = tpu.concatenate %229, %229, %230, %230, %231, %231, %232, %232 in 1 : vector<8x16xf32>, vector<8x16xf32>, vector<8x16xf32>, vector<8x16xf32>, vector<8x16xf32>, vector<8x16xf32>, vector<8x16xf32>, vector<8x16xf32> -> vector<8x128xf32>
    %234 = tpu.iota {dimensions = array<i32: 1>} : vector<8x128xi32>
    %c16_i32_78 = arith.constant 16 : i32
    %c0_i32_79 = arith.constant 0 : i32
    %235 = arith.cmpi eq, %c16_i32_78, %c0_i32_79 : i32
    %c1_i32_80 = arith.constant 1 : i32
    %236 = arith.select %235, %c1_i32_80, %c16_i32_78 : i32
    %237 = vector.broadcast %236 : i32 to vector<8x128xi32>
    %238 = arith.remsi %234, %237 : vector<8x128xi32>
    %c0_i32_81 = arith.constant 0 : i32
    %239 = vector.broadcast %c0_i32_81 : i32 to vector<8x128xi32>
    %240 = arith.cmpi ne, %238, %239 : vector<8x128xi32>
    %c0_i32_82 = arith.constant 0 : i32
    %241 = vector.broadcast %c0_i32_82 : i32 to vector<8x128xi32>
    %242 = arith.cmpi slt, %238, %241 : vector<8x128xi32>
    %c0_i32_83 = arith.constant 0 : i32
    %243 = arith.cmpi slt, %236, %c0_i32_83 : i32
    %244 = vector.broadcast %243 : i1 to vector<8x128xi1>
    %245 = vector.broadcast %244 : vector<8x128xi1> to vector<8x128xi1>
    %246 = arith.xori %242, %245 : vector<8x128xi1>
    %247 = arith.andi %246, %240 : vector<8x128xi1>
    %248 = vector.broadcast %236 : i32 to vector<8x128xi32>
    %249 = arith.addi %238, %248 : vector<8x128xi32>
    %250 = arith.select %247, %249, %238 : vector<8x128xi1>, vector<8x128xi32>
    %c1_i32_84 = arith.constant 1 : i32
    %251 = vector.broadcast %c1_i32_84 : i32 to vector<8x128xi32>
    %252 = arith.cmpi sge, %250, %251 : vector<8x128xi32>
    %c1_i32_85 = arith.constant 1 : i32
    %253 = tpu.dynamic_rotate %233 by %c1_i32_85 dim 1 : vector<8x128xf32>, i32 -> vector<8x128xf32>
    %cst_86 = arith.constant 0.000000e+00 : f32
    %254 = vector.broadcast %cst_86 : f32 to vector<8x128xf32>
    %255 = arith.select %252, %253, %254 : vector<8x128xi1>, vector<8x128xf32>
    %c14_i32_87 = arith.constant 14 : i32
    %256 = vector.broadcast %c14_i32_87 : i32 to vector<8x128xi32>
    %257 = arith.cmpi sle, %250, %256 : vector<8x128xi32>
    %c127_i32 = arith.constant 127 : i32
    %258 = tpu.dynamic_rotate %233 by %c127_i32 dim 1 : vector<8x128xf32>, i32 -> vector<8x128xf32>
    %cst_88 = arith.constant 0.000000e+00 : f32
    %259 = vector.broadcast %cst_88 : f32 to vector<8x128xf32>
    %260 = arith.select %257, %258, %259 : vector<8x128xi1>, vector<8x128xf32>
    %c0_89 = arith.constant 0 : index
    %c0_90 = arith.constant 0 : index
    %261 = vector.load %arg19[%c0_89, %c0_90] : memref<4x128xf32, #tpu.memory_space<vmem>>, vector<4x128xf32>
    %262 = vector.extract_strided_slice %261 {offsets = [0, 0], sizes = [1, 128], strides = [1, 1]} : vector<4x128xf32> to vector<1x128xf32>
    %263 = vector.broadcast %262 : vector<1x128xf32> to vector<8x128xf32>
    %264 = arith.mulf %263, %255 : vector<8x128xf32>
    %265 = vector.extract_strided_slice %261 {offsets = [1, 0], sizes = [1, 128], strides = [1, 1]} : vector<4x128xf32> to vector<1x128xf32>
    %266 = vector.broadcast %265 : vector<1x128xf32> to vector<8x128xf32>
    %267 = arith.mulf %266, %233 : vector<8x128xf32>
    %268 = arith.addf %264, %267 : vector<8x128xf32>
    %269 = vector.extract_strided_slice %261 {offsets = [2, 0], sizes = [1, 128], strides = [1, 1]} : vector<4x128xf32> to vector<1x128xf32>
    %270 = vector.broadcast %269 : vector<1x128xf32> to vector<8x128xf32>
    %271 = arith.mulf %270, %260 : vector<8x128xf32>
    %272 = arith.addf %268, %271 : vector<8x128xf32>
    %273 = vector.extract_strided_slice %261 {offsets = [3, 0], sizes = [1, 128], strides = [1, 1]} : vector<4x128xf32> to vector<1x128xf32>
    %274 = vector.broadcast %273 : vector<1x128xf32> to vector<8x128xf32>
    %275 = arith.addf %272, %274 : vector<8x128xf32>
    %c0_91 = arith.constant 0 : index
    %c0_92 = arith.constant 0 : index
    %276 = vector.load %arg20[%c0_91, %c0_92] : memref<128x256xf32, #tpu.memory_space<vmem>>, vector<128x256xf32>
    %cst_93 = arith.constant dense<0.000000e+00> : vector<8x256xf32>
    %277 = tpu.matmul %275, %276, %cst_93 {dimension_numbers = #tpu.dot_dimension_numbers<[1], [0], [0], [1], [0, 0, 1, 1], [], []>} : vector<8x128xf32>, vector<128x256xf32>, vector<8x256xf32> -> vector<8x256xf32>
    %c0_94 = arith.constant 0 : index
    %c0_95 = arith.constant 0 : index
    %278 = vector.load %arg21[%c0_94, %c0_95] : memref<1x256xf32, #tpu.memory_space<vmem>>, vector<1x256xf32>
    %279 = vector.broadcast %278 : vector<1x256xf32> to vector<8x256xf32>
    %280 = arith.addf %277, %279 : vector<8x256xf32>
    %cst_96 = arith.constant 0.000000e+00 : f32
    %281 = vector.broadcast %cst_96 : f32 to vector<8x256xf32>
    %282 = arith.cmpf oge, %280, %281 : vector<8x256xf32>
    %cst_97 = arith.constant 0.00999999977 : f32
    %283 = vector.broadcast %cst_97 : f32 to vector<8x256xf32>
    %284 = arith.mulf %283, %280 : vector<8x256xf32>
    %285 = arith.select %282, %280, %284 : vector<8x256xi1>, vector<8x256xf32>
    %c0_98 = arith.constant 0 : index
    %c0_99 = arith.constant 0 : index
    %286 = vector.load %arg22[%c0_98, %c0_99] : memref<256x128xf32, #tpu.memory_space<vmem>>, vector<256x128xf32>
    %cst_100 = arith.constant dense<0.000000e+00> : vector<8x128xf32>
    %287 = tpu.matmul %285, %286, %cst_100 {dimension_numbers = #tpu.dot_dimension_numbers<[1], [0], [0], [1], [0, 0, 1, 1], [], []>} : vector<8x256xf32>, vector<256x128xf32>, vector<8x128xf32> -> vector<8x128xf32>
    %c0_101 = arith.constant 0 : index
    %c0_102 = arith.constant 0 : index
    %288 = vector.load %arg23[%c0_101, %c0_102] : memref<1x128xf32, #tpu.memory_space<vmem>>, vector<1x128xf32>
    %289 = vector.broadcast %288 : vector<1x128xf32> to vector<8x128xf32>
    %290 = arith.addf %287, %289 : vector<8x128xf32>
    %c0_103 = arith.constant 0 : index
    %c0_104 = arith.constant 0 : index
    %291 = vector.load %arg24[%c0_103, %c0_104] : memref<128x4xf32, #tpu.memory_space<vmem>>, vector<128x4xf32>
    %cst_105 = arith.constant dense<0.000000e+00> : vector<8x4xf32>
    %292 = tpu.matmul %290, %291, %cst_105 {dimension_numbers = #tpu.dot_dimension_numbers<[1], [0], [0], [1], [0, 0, 1, 1], [], []>} : vector<8x128xf32>, vector<128x4xf32>, vector<8x4xf32> -> vector<8x4xf32>
    %c0_106 = arith.constant 0 : index
    %c0_107 = arith.constant 0 : index
    %293 = vector.load %arg25[%c0_106, %c0_107] : memref<1x4xf32, #tpu.memory_space<vmem>>, vector<1x4xf32>
    %294 = vector.broadcast %293 : vector<1x4xf32> to vector<8x4xf32>
    %295 = arith.addf %292, %294 : vector<8x4xf32>
    %cst_108 = arith.constant 0.000000e+00 : f32
    %296 = vector.broadcast %cst_108 : f32 to vector<8x4xf32>
    %297 = arith.maximumf %295, %296 : vector<8x4xf32>
    %c0_109 = arith.constant 0 : index
    %c0_110 = arith.constant 0 : index
    %298 = vector.load %arg26[%c0_109, %c0_110] : memref<4x128xf32, #tpu.memory_space<vmem>>, vector<4x128xf32>
    %cst_111 = arith.constant dense<0.000000e+00> : vector<8x128xf32>
    %299 = tpu.matmul %297, %298, %cst_111 {dimension_numbers = #tpu.dot_dimension_numbers<[1], [0], [0], [1], [0, 0, 1, 1], [], []>} : vector<8x4xf32>, vector<4x128xf32>, vector<8x128xf32> -> vector<8x128xf32>
    %c0_112 = arith.constant 0 : index
    %c0_113 = arith.constant 0 : index
    %300 = vector.load %arg27[%c0_112, %c0_113] : memref<1x128xf32, #tpu.memory_space<vmem>>, vector<1x128xf32>
    %301 = vector.broadcast %300 : vector<1x128xf32> to vector<8x128xf32>
    %302 = arith.addf %299, %301 : vector<8x128xf32>
    %303 = arith.negf %302 : vector<8x128xf32>
    %304 = math.exp %303 : vector<8x128xf32>
    %cst_114 = arith.constant 1.000000e+00 : f32
    %305 = vector.broadcast %cst_114 : f32 to vector<8x128xf32>
    %306 = arith.addf %305, %304 : vector<8x128xf32>
    %307 = arith.divf %305, %306 : vector<8x128xf32>
    %308 = arith.mulf %290, %307 : vector<8x128xf32>
    %c0_115 = arith.constant 0 : index
    %c0_116 = arith.constant 0 : index
    %309 = vector.load %arg28[%c0_115, %c0_116] : memref<128x8xf32, #tpu.memory_space<vmem>>, vector<128x8xf32>
    %cst_117 = arith.constant dense<0.000000e+00> : vector<8x8xf32>
    %310 = tpu.matmul %308, %309, %cst_117 {dimension_numbers = #tpu.dot_dimension_numbers<[1], [0], [0], [1], [0, 0, 1, 1], [], []>} : vector<8x128xf32>, vector<128x8xf32>, vector<8x8xf32> -> vector<8x8xf32>
    %c0_118 = arith.constant 0 : index
    %c0_119 = arith.constant 0 : index
    %311 = vector.load %arg29[%c0_118, %c0_119] : memref<1x8xf32, #tpu.memory_space<vmem>>, vector<1x8xf32>
    %312 = vector.broadcast %311 : vector<1x8xf32> to vector<8x8xf32>
    %313 = arith.addf %310, %312 : vector<8x8xf32>
    %c0_120 = arith.constant 0 : index
    %c0_121 = arith.constant 0 : index
    %314 = vector.load %arg30[%c0_120, %c0_121] : memref<8x8xf32, #tpu.memory_space<vmem>>, vector<8x8xf32>
    tpu.vector_store %arg30[%c0_120, %c0_121], %313 {strides = array<i32>} : memref<8x8xf32, #tpu.memory_space<vmem>>, vector<8x8xf32>,
    return
  }
}

</mosaic_0001>

<bundles_post_ra>
// kernel: dpad_se_forward.1
= control target key start
LH: loop header
LB: loop body
LE: loop exit
PB: predicated region body
PF: predicated region fallthrough
CT: control target
= control target key end

     0   :  { %s2478_s6 = smov 1   ;;  %s2479_s10 = smov 2   ;;  %s3095_s0 = inlined_call_operand.smem [shape: u32[31], index: -1, kind: input, shape index: {}] }
   0x1   :  { %s2535_s5 = sld [smem:[%s3095_s0]]   ;;  %s2480_s14 = smov 3  }
   0x2   :  { %s2540_s9 = sld [smem:[%s3095_s0 + %s2478_s6]]   ;;  %s2481_s18 = smov 4  }
   0x3   :  { %s2545_s13 = sld [smem:[%s3095_s0 + %s2479_s10]]   ;;  %s2482_s22 = smov 5  }
   0x4   :  { %s2550_s17 = sld [smem:[%s3095_s0 + %s2480_s14]]   ;;  %s2483_s26 = smov 6  }
   0x5   :  { %s2555_s21 = sld [smem:[%s3095_s0 + %s2481_s18]]   ;;  %s2484_s30 = smov 7  }
   0x6   :  { %s2560_s25 = sld [smem:[%s3095_s0 + %s2482_s22]]   ;;  %s2485_s4 = smov 8  }
   0x7   :  { %s2565_s29 = sld [smem:[%s3095_s0 + %s2483_s26]]   ;;  %s2486_s10 = smov 9  }
   0x8   :  { %s2570_s3 = sld [smem:[%s3095_s0 + %s2484_s30]]   ;;  %s2487_s15 = smov 10  }
   0x9   :  { %s2575_s8 = sld [smem:[%s3095_s0 + %s2485_s4]]   ;;  %s2488_s20 = smov 11  }
   0xa   :  { %s2580_s14 = sld [smem:[%s3095_s0 + %s2486_s10]]   ;;  %s2489_s26 = smov 12  }
   0xb   :  { %s2585_s19 = sld [smem:[%s3095_s0 + %s2487_s15]]   ;;  %s2490_s1 = smov 13  }
   0xc   :  { %s2590_s24 = sld [smem:[%s3095_s0 + %s2488_s20]]   ;;  %s2491_s7 = smov 14  }
   0xd   :  { %s2595_s30 = sld [smem:[%s3095_s0 + %s2489_s26]]   ;;  %s2492_s15 = smov 15  }
   0xe   :  { %s2600_s6 = sld [smem:[%s3095_s0 + %s2490_s1]]   ;;  %s2493_s22 = smov 16  }
   0xf   :  { %s2605_s12 = sld [smem:[%s3095_s0 + %s2491_s7]]   ;;  %s2494_s28 = smov 17  }
  0x10   :  { %s2610_s20 = sld [smem:[%s3095_s0 + %s2492_s15]]   ;;  %s2495_s7 = smov 18  }
  0x11   :  { %s2615_s27 = sld [smem:[%s3095_s0 + %s2493_s22]]   ;;  %s2496_s15 = smov 19  }
  0x12   :  { %s2620_s4 = sld [smem:[%s3095_s0 + %s2494_s28]]   ;;  %s2497_s22 = smov 20  }
  0x13   :  { %s2498_s28 = smov 21  }
  0x15   :  { %3101 = sst [smem:[#allocation5_spill]] %s2605_s12 }
  0x16   :  { %3102 = sst [smem:[#allocation6_spill]] %s2610_s20 }
  0x17   :  { %3103 = sst [smem:[#allocation7_spill]] %s2615_s27 }
  0x18   :  { %3104 = sst [smem:[#allocation8_spill]] %s2620_s4 }
  0x19   :  { %s2625_s12 = sld [smem:[%s3095_s0 + %s2495_s7]]   ;;  %s2499_s7 = smov 22  }
  0x1a   :  { %s2630_s20 = sld [smem:[%s3095_s0 + %s2496_s15]]   ;;  %s2500_s15 = smov 23  }
  0x1b   :  { %s2635_s27 = sld [smem:[%s3095_s0 + %s2497_s22]]   ;;  %s2501_s22 = smov 24  }
  0x1c   :  { %s2640_s4 = sld [smem:[%s3095_s0 + %s2498_s28]]   ;;  %s2502_s28 = smov 25  }
  0x1f   :  { %3105 = sst [smem:[#allocation9_spill]] %s2625_s12 }
  0x20   :  { %3106 = sst [smem:[#allocation10_spill]] %s2630_s20 }
  0x21   :  { %3107 = sst [smem:[#allocation11_spill]] %s2635_s27 }
  0x22   :  { %3108 = sst [smem:[#allocation12_spill]] %s2640_s4 }
  0x23   :  { %s2645_s12 = sld [smem:[%s3095_s0 + %s2499_s7]]   ;;  %s2503_s7 = smov 26  }
  0x24   :  { %s2650_s20 = sld [smem:[%s3095_s0 + %s2500_s15]]   ;;  %s2504_s15 = smov 27  }
  0x25   :  { %s2655_s27 = sld [smem:[%s3095_s0 + %s2501_s22]]   ;;  %s2505_s22 = smov 28  }
  0x26   :  { %s2660_s4 = sld [smem:[%s3095_s0 + %s2502_s28]]   ;;  %s2506_s28 = smov 29  }
  0x29   :  { %3109 = sst [smem:[#allocation13_spill]] %s2645_s12 }
  0x2a   :  { %3110 = sst [smem:[#allocation14_spill]] %s2650_s20 }
  0x2b   :  { %3111 = sst [smem:[#allocation15_spill]] %s2655_s27 }
  0x2c   :  { %3112 = sst [smem:[#allocation16_spill]] %s2660_s4 }
  0x2d   :  { %s2665_s12 = sld [smem:[%s3095_s0 + %s2503_s7]]   ;;  %s2507_s7 = smov 30  }
  0x2e   :  { %s2670_s20 = sld [smem:[%s3095_s0 + %s2504_s15]]  }
  0x2f   :  { %s2675_s27 = sld [smem:[%s3095_s0 + %s2505_s22]]  }
  0x30   :  { %s2680_s4 = sld [smem:[%s3095_s0 + %s2506_s28]]  }
  0x33   :  { %3113 = sst [smem:[#allocation17_spill]] %s2665_s12 }
  0x34   :  { %s2685_s12 = sld [smem:[%s3095_s0 + %s2507_s7]]  }
  0x35   :  { %v127_v0 = vld [vmem:[%s2535_s5] sm:$0xff]  ;;  %s2508_s15 = smov 16  }
  0x36   :  { %129 = vrot.lane.b32.xlu0 %v127_v0, %s2508_s15 }
  0x37   :  { %66 = vsyncpa [#allocation3], 0  ;;  %vm132_vm0 = vcmask 130048   ;;  %s2509_s16 = smov 32   ;;  %vm149_vm1 = vcmask 1047808   ;;  %v189_v5 = vld [vmem:[%s2545_s13] sm:$0xff]  ;;  %v134_v36 = vlaneseq }
  0x38   :  { %v190_v6 = vld [vmem:[%s2545_s13 + $0x8] sm:$0xff]  ;;  %v2510_v8 = vmov 0.0|0.0   ;;  %v191_v9 = vld [vmem:[%s2545_s13 + $0x10] sm:$0xff]  ;;  %v192_v10 = vld [vmem:[%s2545_s13 + $0x18] sm:$0xff]  ;;  %vm2511_vm2 = vmmov 0   ;;  %v2512_v12 = vmov 0.0  }
  0x39   :  { %v2140_v7 = vpack.c.bf16 %v190_v6, %v189_v5  ;;  %2139 = vmatprep.subr.bf16.mxu0 %v2510_v8  ;;  %2145 = vmatprep.subr.bf16.mxu1 %v2510_v8  ;;  %v2143_v11 = vpack.c.bf16 %v192_v10, %v191_v9  ;;  %v277_v13 = vld [vmem:[%s2555_s21] sm:$0xff]  ;;  %v278_v14 = vld [vmem:[%s2555_s21 + $0x8] sm:$0xff]  ;;  %v279_v15 = vld [vmem:[%s2555_s21 + $0x10] sm:$0xff]  ;;  %s2513_s0 = smov 127   ;;  %s2514_s5 = smov 97   ;;  %v135_v37 = vand.u32 127, %v134_v36 }
  0x3a   :  { %1942 = vmatprep.mubr.msk.f32.mxu0 %vm2511_vm2, %v2512_v12  ;;  %1977 = vmatprep.mubr.msk.f32.mxu1 %vm2511_vm2, %v2512_v12  ;;  %v2146_v16 = vpack.c.bf16 %v278_v14, %v277_v13  ;;  %v280_v17 = vld [vmem:[%s2555_s21 + $0x18] sm:$0xff]  ;;  %v281_v21 = vld [vmem:[%s2555_s21 + $0x20] sm:$0xff]  ;;  %v282_v22 = vld [vmem:[%s2555_s21 + $0x28] sm:$0xff]  ;;  %v168_v38 = vshrl.u32 %v134_v36, 7  ;;  %vm200_vm5 = vcmask 261120   ;;  %v2517_v13 = vmov 0  }
  0x3b   :  { %2141 = vmatpush3.bf16.msra.mxu0 %v2140_v7  ;;  %v2149_v20 = vpack.c.bf16 %v280_v17, %v279_v15  ;;  %v2152_v23 = vpack.c.bf16 %v282_v22, %v281_v21  ;;  %v283_v24 = vld [vmem:[%s2555_s21 + $0x30] sm:$0xff]  ;;  %v284_v25 = vld [vmem:[%s2555_s21 + $0x38] sm:$0xff]  ;;  %v285_v27 = vld [vmem:[%s2555_s21 + $0x40] sm:$0xff]  ;;  %v140_v39 = vand.u32 15, %v135_v37  ;;  %2433 = vset.pattern.permute.xlu1 %v2517_v13  ;;  %s2518_s13 = smov 112   ;;  %vm521_vm8 = vcmask 523264  }
  0x3c   :  { %2142 = vmatprep.subr.bf16.mxu0 %v2510_v8  ;;  %2147 = vmatpush3.bf16.msra.mxu1 %v2146_v16  ;;  %v2155_v26 = vpack.c.bf16 %v284_v25, %v283_v24  ;;  %v286_v28 = vld [vmem:[%s2555_s21 + $0x48] sm:$0xff]  ;;  %v287_v30 = vld [vmem:[%s2555_s21 + $0x50] sm:$0xff]  ;;  %v288_v31 = vld [vmem:[%s2555_s21 + $0x58] sm:$0xff]  ;;  %v2733_v40 = vsub.s32 1, %v168_v38  ;;  %v2735_v41 = vsub.s32 0, %v168_v38  ;;  %v2738_v43 = vsub.s32 2, %v168_v38 }
  0x3d   :  { %2148 = vmatprep.subr.bf16.mxu1 %v2510_v8  ;;  %v2158_v29 = vpack.c.bf16 %v286_v28, %v285_v27  ;;  %v2161_v32 = vpack.c.bf16 %v288_v31, %v287_v30  ;;  %v289_v33 = vld [vmem:[%s2555_s21 + $0x60] sm:$0xff]  ;;  %v290_v34 = vld [vmem:[%s2555_s21 + $0x68] sm:$0xff]  ;;  %vm2740_vm3 = vcmp.le.s32.totalorder %v140_v39, 14  ;;  %vm2744_vm4 = vcmp.ge.s32.totalorder %v140_v39, 1  ;;  %v291_v61 = vld [vmem:[%s2555_s21 + $0x70] sm:$0xff]  ;;  %s2525_s18 = smov 1  }
  0x3e   :  { %v2164_v35 = vpack.c.bf16 %v290_v34, %v289_v33  ;;  %v166_v42 = vld [vmem:[%s2540_s9] sm:$0xf]  ;;  %v2751_v50 = vsub.s32 3, %v168_v38  ;;  %v292_v62 = vld [vmem:[%s2555_s21 + $0x78] sm:$0xff]  ;;  %s2515_s9 = smov 126   ;;  %v420_v22 = vld [vmem:[%s2565_s29 + $0x8] sm:$0xff] }
  0x3f   :  { %2144 = vmatpush3.bf16.msra.mxu0 %v2143_v11  ;;  %v170_v46 = vrot.slane %v166_v42, %v2735_v41  ;;  %v175_v47 = vrot.slane %v166_v42, %v2733_v40  ;;  %v181_v48 = vrot.slane %v166_v42, %v2738_v43  ;;  %v2167_v63 = vpack.c.bf16 %v292_v62, %v291_v61  ;;  %v1747_v6 = vld [vmem:[%s2560_s25] ss:$0 sm:$0xff]  ;;  %v422_v25 = vld [vmem:[%s2565_s29 + $0x18] sm:$0xff]  ;;  %v507_v38 = vld [vmem:[%s2575_s8 + $0x8] sm:$0xff]  ;;  %s2520_s21 = smov 65   ;;  %s3118_s25 = sld [smem:[#allocation5_spill]] }
  0x40   :  { %2169 = vmatprep.subr.bf16.mxu0 %v2510_v8  ;;  %2150 = vmatpush3.bf16.msra.mxu1 %v2149_v20  ;;  %v187_v57 = vrot.slane %v166_v42, %v2751_v50  ;;  %v2516_v11 = vmov 1   ;;  %v419_v21 = vld [vmem:[%s2565_s29] sm:$0xff]  ;;  %vm607_vm10 = vcmask 392192   ;;  %vm609_vm11 = vcmask 1048064   ;;  %s3125_s22 = sld [smem:[#allocation10_spill]]  ;;  %s3126_s23 = sld [smem:[#allocation15_spill]] }
  0x41   :  { %2151 = vmatprep.subr.bf16.mxu1 %v2510_v8  ;;  %2432 = vset.pattern.permute.xlu0 %v2516_v11  ;;  %v2170_v24 = vpack.c.bf16 %v420_v22, %v419_v21  ;;  %v506_v37 = vld [vmem:[%s2575_s8] sm:$0xff]  ;;  %v655_v21 = vld [vmem:[%s2590_s24 + $0x38] sm:$0xff]  ;;  %s3127_s26 = sld [smem:[#allocation12_spill]]  ;;  %s3128_s28 = sld [smem:[#allocation14_spill]] }
  0x42   :  { %s3129_s1 = sld [smem:[#allocation17_spill]]  ;;  %s3130_s2 = sld [smem:[#allocation16_spill]] }
  0x44   :  { %2153 = vmatpush3.bf16.msra.mxu1 %v2152_v23  ;;  %v421_v23 = vld [vmem:[%s2565_s29 + $0x10] sm:$0xff]  ;;  %s2521_s29 = smov 124  }
  0x45   :  { %2154 = vmatprep.subr.bf16.mxu1 %v2510_v8 }
  0x48   :  { %2156 = vmatpush3.bf16.msra.mxu1 %v2155_v26  ;;  %v2173_v26 = vpack.c.bf16 %v422_v25, %v421_v23  ;;  %v654_v25 = vld [vmem:[%s2590_s24 + $0x30] sm:$0xff] }
  0x49   :  { %2157 = vmatprep.subr.bf16.mxu1 %v2510_v8 }
  0x4c   :  { %2159 = vmatpush3.bf16.msra.mxu1 %v2158_v29 }
  0x4d   :  { %2160 = vmatprep.subr.bf16.mxu1 %v2510_v8 }
  0x50   :  { %2162 = vmatpush3.bf16.msra.mxu1 %v2161_v32 }
  0x51   :  { %2163 = vmatprep.subr.bf16.mxu1 %v2510_v8 }
  0x54   :  { %2165 = vmatpush3.bf16.msra.mxu1 %v2164_v35 }
  0x55   :  { %2166 = vmatprep.subr.bf16.mxu1 %v2510_v8 }
  0x58   :  { %2168 = vmatpush3.bf16.msra.mxu1 %v2167_v63 }
  0xa8   :  { %v130_v1 = vpop.permute.xlu0 %129 }
  0xa9   :  { %v2690_v2 = vsel %vm132_vm0, %v127_v0, %v130_v1  ;;  %v1745_v0 = vld [vmem:[%s2550_s17] ss:$0 sm:$0xff]  ;;  %s2519_s17 = smov 64  }
  0xaa   :  { %150 = vrot.lane.b32.xlu0 %v2690_v2, %s2509_s16  ;;  %v176_v55 = vmul.f32 %v175_v47, %v2690_v2 }
 0x11c   :  { %v151_v3 = vpop.permute.xlu0 %150 }
 0x11d   :  { %v152_v4 = vsel %vm149_vm1, %v151_v3, %v2690_v2 }
 0x11e   :  { %153 = vrot.lane.b32.xlu1 %v152_v4, %s2509_s16 }
 0x190   :  { %v154_v18 = vpop.permute.xlu1 %153 }
 0x191   :  { %v155_v19 = vsel %vm149_vm1, %v154_v18, %v2690_v2  ;;  %vm1154_vm1 = vcmask 654336  }
 0x192   :  { %162 = vrot.lane.b32.xlu0 %v155_v19, %s2513_s0  ;;  %157 = vrot.lane.b32.xlu1 %v155_v19, %s2514_s5 }
 0x204   :  { %v163_v49 = vpop.permute.xlu0 %162  ;;  %v158_v51 = vpop.permute.xlu1 %157 }
 0x205   :  { %v165_v52 = vsel %vm2740_vm3, %v163_v49, 0.0  ;;  %v160_v53 = vsel %vm2744_vm4, %v158_v51, 0.0  ;;  %v509_v49 = vld [vmem:[%s2575_s8 + $0x18] sm:$0xff] }
 0x206   :  { %v171_v54 = vmul.f32 %v170_v46, %v160_v53  ;;  %v182_v56 = vmul.f32 %v181_v48, %v165_v52  ;;  %v2176_v46 = vpack.c.bf16 %v507_v38, %v506_v37  ;;  %v508_v48 = vld [vmem:[%s2575_s8 + $0x10] sm:$0xff]  ;;  %v510_v53 = vld [vmem:[%s2575_s8 + $0x20] sm:$0xff] }
 0x207   :  { %v2179_v52 = vpack.c.bf16 %v509_v49, %v508_v48  ;;  %v660_v38 = vld [vmem:[%s2590_s24 + $0x60] sm:$0xff] }
 0x208   :  { %v177_v58 = vadd.f32 %v176_v55, %v171_v54  ;;  %v511_v54 = vld [vmem:[%s2575_s8 + $0x28] sm:$0xff]  ;;  %v756_v48 = vld [vmem:[%s2600_s6] sm:$0xff] }
 0x209   :  { %v2182_v55 = vpack.c.bf16 %v511_v54, %v510_v53  ;;  %v775_v53 = vld [vmem:[%s2600_s6 + $0x98] sm:$0xff] }
 0x20a   :  { %v183_v59 = vadd.f32 %v182_v56, %v177_v58  ;;  %v512_v56 = vld [vmem:[%s2575_s8 + $0x30] sm:$0xff] }
 0x20c   :  { %v2759_v60 = vadd.f32 %v187_v57, %v183_v59  ;;  %v513_v57 = vld [vmem:[%s2575_s8 + $0x38] sm:$0xff]  ;;  %v1749_v59 = vld [vmem:[%s2570_s3] ss:$0 sm:$0xff]  ;;  %s3119_s3 = sld [smem:[#allocation6_spill]]  ;;  %s3120_s8 = sld [smem:[#allocation8_spill]] }
 0x20d   :  { %v2185_v58 = vpack.c.bf16 %v513_v57, %v512_v56  ;;  %v758_v57 = vld [vmem:[%s2600_s6 + $0x10] sm:$0xff] }
 0x20e   :  { %1943 = vmatmul.mubr.msk.f32.vlgmr.msra.gmra.mrb[0].mxu0 %vm200_vm5, %v2759_v60 }
 0x20f   :  { %1988 = vmatprep.mubr.msk.f32.mxu0 %vm2511_vm2, %v2512_v12  ;;  %2171 = vmatpush3.bf16.msra.mxu0 %v2170_v24  ;;  %v652_v24 = vld [vmem:[%s2590_s24 + $0x20] sm:$0xff] }
 0x210   :  { %2172 = vmatprep.subr.bf16.mxu0 %v2510_v8 }
 0x213   :  { %2174 = vmatpush3.bf16.msra.mxu0 %v2173_v26  ;;  %v2193_v26 = vpack.c.bf16 %v654_v25, %v652_v24  ;;  %v625_v25 = vld [vmem:[%s2585_s19] sm:$0xf]  ;;  %s3122_s19 = sld [smem:[#allocation9_spill]] }
 0x214   :  { %2175 = vmatprep.subr.bf16.mxu0 %v2510_v8 }
 0x2e1   :  { %v270_v1 = vpop.f32.mrb[0].mxu0 }
 0x2e2   :  { %v271_v2 = vadd.f32 %v1745_v0, %v270_v1  ;;  %v1944_v3 = vpop.f32.mrb[1].mxu0  ;;  %v1751_v1 = vld [vmem:[%s2580_s14] ss:$0 sm:$0xff]  ;;  %s3121_s14 = sld [smem:[#allocation7_spill]] }
 0x2e4   :  { %v275_v4 = vmul.f32 0.01, %v271_v2  ;;  %vm274_vm6 = vcmp.ge.f32.partialorder %v271_v2, 0.0 }
 0x2e6   :  { %v276_v5 = vsel %vm274_vm6, %v271_v2, %v275_v4  ;;  %vm1156_vm6 = vcmask 785408  }
 0x2e7   :  { %1978 = vmatmul.mubr.f32.vlgmr.msra.gmra.mrb[0].mxu1 %v276_v5 }
 0x3ba   :  { %v366_v7 = vpop.f32.mrb[0].mxu1 }
 0x3bb   :  { %v367_v9 = vadd.f32 %v1747_v6, %v366_v7  ;;  %v1979_v10 = vpop.f32.mrb[1].mxu1 }
 0x3bd   :  { %371 = vrot.lane.b32.xlu1 %v367_v9, %s2515_s9 }
 0x42f   :  { %v372_v14 = vpop.permute.xlu1 %371 }
 0x430   :  { %v374_v15 = vsub.f32 %v367_v9, %v372_v14 }
 0x432   :  { %v1748_v16 = vmul.f32 -1.442695, %v374_v15  ;;  %v649_v15 = vld [vmem:[%s2590_s24 + $0x8] sm:$0xff] }
 0x434   :  { %2442 = vpow2.f32 %v1748_v16  ;;  %v651_v16 = vld [vmem:[%s2590_s24 + $0x18] sm:$0xff] }
 0x43e   :  { %v2443_v17 = vpop.eup %2442 }
 0x43f   :  { %v378_v18 = vadd.f32 1.0, %v2443_v17  ;;  %v648_v17 = vld [vmem:[%s2590_s24] sm:$0xff] }
 0x441   :  { %2444 = vrcp.f32 %v378_v18  ;;  %v2187_v18 = vpack.c.bf16 %v651_v16, %v649_v15  ;;  %v764_v16 = vld [vmem:[%s2600_s6 + $0x40] sm:$0xff] }
 0x44b   :  { %v2445_v19 = vpop.eup %2444 }
 0x44c   :  { %v381_v20 = vsub.f32 1.0, %v2445_v19 }
 0x44e   :  { %390 = vperm.xlu1 %2433, %v381_v20   ;;  %400 = vperm.xlu0 %2432, %v381_v20   ;;  %v653_v20 = vld [vmem:[%s2590_s24 + $0x28] sm:$0xff] }
 0x44f   :  { %v2191_v23 = vpack.c.bf16 %v655_v21, %v653_v20 }
 0x452   :  { %2434 = vset.pattern.permute.xlu1 %v2516_v11 }
 0x453   :  { %395 = vperm.xlu1 %2434, %v2445_v19  }
 0x457   :  { %2435 = vset.pattern.permute.xlu1 %v2517_v13 }
 0x458   :  { %384 = vperm.xlu1 %2435, %v2445_v19   ;;  %v650_v19 = vld [vmem:[%s2590_s24 + $0x10] sm:$0xff] }
 0x459   :  { %v2189_v22 = vpack.c.bf16 %v650_v19, %v648_v17  ;;  %v765_v17 = vld [vmem:[%s2600_s6 + $0x48] sm:$0xff]  ;;  %v783_v19 = vld [vmem:[%s2600_s6 + $0xd8] sm:$0xff] }
 0x45a   :  { %v2221_v20 = vpack.c.bf16 %v765_v17, %v764_v16 }
 0x45c   :  { %2436 = vset.pattern.permute.xlu1 %v2516_v11 }
 0x4cd   :  { %v391_v27 = vpop.permute.xlu1 %390  ;;  %v401_v28 = vpop.permute.xlu0 %400 }
 0x4ce   :  { %v403_v29 = vmul.f32 %v401_v28, %v2759_v60  ;;  %v393_v32 = vmul.f32 %v391_v27, %v2759_v60 }
 0x4d0   :  { %410 = vrot.lane.b32.xlu0 %v403_v29, %s2518_s13  ;;  %v657_v29 = vld [vmem:[%s2590_s24 + $0x48] sm:$0xff] }
 0x4d2   :  { %v396_v30 = vpop.permute.xlu1 %395 }
 0x4d3   :  { %v398_v31 = vmul.f32 %v396_v30, %v2759_v60  ;;  %v659_v30 = vld [vmem:[%s2590_s24 + $0x58] sm:$0xff] }
 0x4d5   :  { %405 = vrot.lane.b32.xlu0 %v398_v31, %s2518_s13  ;;  %v2195_v31 = vpack.c.bf16 %v659_v30, %v657_v29 }
 0x4d7   :  { %v385_v35 = vpop.permute.xlu1 %384 }
 0x4d8   :  { %v387_v39 = vmul.f32 %v385_v35, %v2759_v60  ;;  %v661_v35 = vld [vmem:[%s2590_s24 + $0x68] sm:$0xff] }
 0x542   :  { %v411_v33 = vpop.permute.xlu0 %410 }
 0x543   :  { %v413_v34 = vadd.f32 %v411_v33, %v393_v32  ;;  %v656_v32 = vld [vmem:[%s2590_s24 + $0x40] sm:$0xff]  ;;  %v658_v33 = vld [vmem:[%s2590_s24 + $0x50] sm:$0xff] }
 0x545   :  { %415 = vrot.lane.b32.xlu1 %v413_v34, %s2508_s15  ;;  %v2197_v34 = vpack.c.bf16 %v658_v33, %v656_v32 }
 0x547   :  { %v406_v36 = vpop.permute.xlu0 %405 }
 0x548   :  { %v408_v42 = vadd.f32 %v406_v36, %v387_v39  ;;  %v663_v36 = vld [vmem:[%s2590_s24 + $0x78] sm:$0xff]  ;;  %v662_v39 = vld [vmem:[%s2590_s24 + $0x70] sm:$0xff]  ;;  %s3123_s24 = sld [smem:[#allocation11_spill]] }
 0x549   :  { %v2199_v37 = vpack.c.bf16 %v663_v36, %v661_v35  ;;  %v646_v36 = vrot.slane %v625_v25, %v2751_v50 }
 0x5b7   :  { %v416_v47 = vpop.permute.xlu1 %415 }
 0x5b8   :  { %v418_v51 = vsel %vm132_vm0, %v408_v42, %v416_v47  ;;  %v2201_v42 = vpack.c.bf16 %v662_v39, %v660_v38  ;;  %v773_v47 = vld [vmem:[%s2600_s6 + $0x88] sm:$0xff] }
 0x5b9   :  { %1989 = vmatmul.mubr.msk.f32.vlgmr.msra.gmra.mrb[2].mxu0 %vm200_vm5, %v418_v51  ;;  %v757_v51 = vld [vmem:[%s2600_s6 + $0x8] sm:$0xff] }
 0x5ba   :  { %2177 = vmatpush3.bf16.msra.mxu0 %v2176_v46  ;;  %2007 = vmatprep.mubr.msk.f32.mxu0 %vm2511_vm2, %v2512_v12  ;;  %v772_v46 = vld [vmem:[%s2600_s6 + $0x80] sm:$0xff] }
 0x5bb   :  { %2178 = vmatprep.subr.bf16.mxu0 %v2510_v8  ;;  %v2203_v49 = vpack.c.bf16 %v773_v47, %v772_v46  ;;  %v768_v47 = vld [vmem:[%s2600_s6 + $0x60] sm:$0xff] }
 0x5bd   :  { %2204 = vmatprep.subr.bf16.mxu1 %v2203_v49 }
 0x5be   :  { %2180 = vmatpush3.bf16.msra.mxu0 %v2179_v52  ;;  %v774_v52 = vld [vmem:[%s2600_s6 + $0x90] sm:$0xff] }
 0x5bf   :  { %2181 = vmatprep.subr.bf16.mxu0 %v2510_v8  ;;  %v2207_v56 = vpack.c.bf16 %v775_v53, %v774_v52  ;;  %v787_v52 = vld [vmem:[%s2600_s6 + $0xf8] sm:$0xff] }
 0x5c2   :  { %2183 = vmatpush3.bf16.msra.mxu0 %v2182_v55  ;;  %v2205_v55 = vpack.c.bf16 %v757_v51, %v756_v48  ;;  %v769_v48 = vld [vmem:[%s2600_s6 + $0x68] sm:$0xff]  ;;  %v786_v51 = vld [vmem:[%s2600_s6 + $0xf0] sm:$0xff] }
 0x5c3   :  { %2184 = vmatprep.subr.bf16.mxu0 %v2510_v8  ;;  %v2229_v49 = vpack.c.bf16 %v769_v48, %v768_v47  ;;  %v2231_v53 = vpack.c.bf16 %v787_v52, %v786_v51 }
 0x5c4   :  { %2206 = vmatpush3.bf16.msra.mxu1 %v2205_v55  ;;  %v771_v55 = vld [vmem:[%s2600_s6 + $0x78] sm:$0xff] }
 0x5c5   :  { %2208 = vmatprep.subr.bf16.mxu1 %v2207_v56 }
 0x5c6   :  { %2186 = vmatpush3.bf16.msra.mxu0 %v2185_v58  ;;  %v759_v58 = vld [vmem:[%s2600_s6 + $0x18] sm:$0xff] }
 0x5c7   :  { %2188 = vmatprep.subr.bf16.mxu0 %v2187_v18  ;;  %v782_v18 = vld [vmem:[%s2600_s6 + $0xd0] sm:$0xff] }
 0x5c8   :  { %v2223_v21 = vpack.c.bf16 %v783_v19, %v782_v18 }
 0x68c   :  { %v499_v60 = vpop.f32.mrb[2].mxu0 }
 0x68d   :  { %v500_v61 = vadd.f32 %v1749_v59, %v499_v60  ;;  %v1990_v62 = vpop.f32.mrb[3].mxu0  ;;  %v776_v60 = vld [vmem:[%s2600_s6 + $0xa0] sm:$0xff] }
 0x68e   :  { %v2209_v62 = vpack.c.bf16 %v759_v58, %v758_v57  ;;  %v664_v57 = vld [vmem:[%s2595_s30] sm:$0x3]  ;;  %s2524_s30 = smov 48  }
 0x68f   :  { %vm503_vm7 = vcmp.ge.f32.partialorder %v500_v61, 0.0  ;;  %v504_v63 = vmul.f32 0.01, %v500_v61  ;;  %v669_v58 = vrot.slane %v664_v57, %v2735_v41 }
 0x690   :  { %2210 = vmatpush3.bf16.msra.mxu1 %v2209_v62 }
 0x691   :  { %v505_v0 = vsel %vm503_vm7, %v500_v61, %v504_v63  ;;  %v777_v61 = vld [vmem:[%s2600_s6 + $0xa8] sm:$0xff]  ;;  %vm1158_vm7 = vcmask 916480  }
 0x692   :  { %2008 = vmatmul.mubr.msk.f32.vlgmr.msra.gmra.mrb[4].mxu0 %vm521_vm8, %v505_v0  ;;  %v2211_v63 = vpack.c.bf16 %v777_v61, %v776_v60  ;;  %v760_v0 = vld [vmem:[%s2600_s6 + $0x20] sm:$0xff] }
 0x693   :  { %743 = vmatprep.mubr.f32.mxu0 %v2512_v12  ;;  %2190 = vmatpush1.bf16.msra.mxu0 %v2189_v22  ;;  %v766_v22 = vld [vmem:[%s2600_s6 + $0x50] sm:$0xff] }
 0x694   :  { %2192 = vmatprep.subr.bf16.mxu0 %v2191_v23  ;;  %2212 = vmatprep.subr.bf16.mxu1 %v2211_v63  ;;  %v767_v23 = vld [vmem:[%s2600_s6 + $0x58] sm:$0xff] }
 0x695   :  { %v2225_v24 = vpack.c.bf16 %v767_v23, %v766_v22 }
 0x697   :  { %2194 = vmatpush1.bf16.msra.mxu0 %v2193_v26  ;;  %v629_v26 = vrot.slane %v625_v25, %v2735_v41 }
 0x698   :  { %2196 = vmatprep.subr.bf16.mxu0 %v2195_v31 }
 0x69b   :  { %2198 = vmatpush1.bf16.msra.mxu0 %v2197_v34 }
 0x69c   :  { %2200 = vmatprep.subr.bf16.mxu0 %v2199_v37 }
 0x69f   :  { %2202 = vmatpush1.bf16.msra.mxu0 %v2201_v42  ;;  %v784_v42 = vld [vmem:[%s2600_s6 + $0xe0] sm:$0xff] }
 0x6a0   :  { %2235 = vmatprep.subr.bf16.mxu0 %v2510_v8 }
 0x765   :  { %v591_v2 = vpop.f32.mrb[4].mxu0 }
 0x766   :  { %v592_v3 = vadd.f32 %v1751_v1, %v591_v2  ;;  %v2009_v4 = vpop.f32.mrb[5].mxu0  ;;  %v761_v1 = vld [vmem:[%s2600_s6 + $0x28] sm:$0xff]  ;;  %v778_v2 = vld [vmem:[%s2600_s6 + $0xb0] sm:$0xff] }
 0x767   :  { %v2213_v4 = vpack.c.bf16 %v761_v1, %v760_v0 }
 0x768   :  { %v596_v5 = vmul.f32 0.01, %v592_v3  ;;  %vm595_vm9 = vcmp.ge.f32.partialorder %v592_v3, 0.0 }
 0x769   :  { %2214 = vmatpush3.bf16.msra.mxu1 %v2213_v4 }
 0x76a   :  { %v597_v6 = vsel %vm595_vm9, %v592_v3, %v596_v5  ;;  %v779_v3 = vld [vmem:[%s2600_s6 + $0xb8] sm:$0xff] }
 0x76b   :  { %602 = vrot.lane.b32.xlu1 %v597_v6, %s2509_s16  ;;  %599 = vrot.lane.b32.xlu0 %v597_v6, %s2508_s15  ;;  %v2215_v5 = vpack.c.bf16 %v779_v3, %v778_v2 }
 0x76d   :  { %2216 = vmatprep.subr.bf16.mxu1 %v2215_v5  ;;  %v1754_v5 = vld [vmem:[%s3118_s25] ss:$0 sm:$0xff] }
 0x7dd   :  { %v600_v7 = vpop.permute.xlu0 %599  ;;  %v603_v10 = vpop.permute.xlu1 %602 }
 0x7de   :  { %v605_v9 = vsel %vm132_vm0, %v597_v6, %v600_v7  ;;  %v762_v6 = vld [vmem:[%s2600_s6 + $0x30] sm:$0xff] }
 0x7df   :  { %v606_v11 = vsel %vm200_vm5, %v605_v9, %v600_v7  ;;  %v763_v7 = vld [vmem:[%s2600_s6 + $0x38] sm:$0xff]  ;;  %v780_v9 = vld [vmem:[%s2600_s6 + $0xc0] sm:$0xff] }
 0x7e0   :  { %v2808_v14 = vsel %vm607_vm10, %v606_v11, %v603_v10  ;;  %v781_v10 = vld [vmem:[%s2600_s6 + $0xc8] sm:$0xff]  ;;  %v2217_v11 = vpack.c.bf16 %v763_v7, %v762_v6 }
 0x7e1   :  { %610 = vrot.lane.b32.xlu0 %v2808_v14, %s2519_s17  ;;  %v2219_v15 = vpack.c.bf16 %v781_v10, %v780_v9  ;;  %v2522_v10 = vmov 3  }
 0x7e2   :  { %2218 = vmatpush3.bf16.msra.mxu1 %v2217_v11  ;;  %2437 = vset.pattern.permute.xlu0 %v2522_v10 }
 0x7e3   :  { %2220 = vmatprep.subr.bf16.mxu1 %v2219_v15 }
 0x7e6   :  { %2222 = vmatpush3.bf16.msra.mxu1 %v2221_v20 }
 0x7e7   :  { %2224 = vmatprep.subr.bf16.mxu1 %v2223_v21  ;;  %v2523_v21 = vmov 2  }
 0x7ea   :  { %2226 = vmatpush3.bf16.msra.mxu1 %v2225_v24 }
 0x853   :  { %v611_v27 = vpop.permute.xlu0 %610 }
 0x854   :  { %v612_v28 = vsel %vm609_vm11, %v611_v27, %v2808_v14  ;;  %v634_v27 = vrot.slane %v625_v25, %v2733_v40 }
 0x855   :  { %613 = vrot.lane.b32.xlu1 %v612_v28, %s2519_s17  ;;  %v640_v28 = vrot.slane %v625_v25, %v2738_v43 }
 0x856   :  { %v635_v34 = vmul.f32 %v634_v27, %v2808_v14 }
 0x8c7   :  { %v614_v54 = vpop.permute.xlu1 %613 }
 0x8c8   :  { %v615_v59 = vsel %vm609_vm11, %v614_v54, %v2808_v14  ;;  %v785_v14 = vld [vmem:[%s2600_s6 + $0xe8] sm:$0xff]  ;;  %v770_v54 = vld [vmem:[%s2600_s6 + $0x70] sm:$0xff]  ;;  %s3124_s6 = sld [smem:[#allocation13_spill]] }
 0x8c9   :  { %621 = vrot.lane.b32.xlu1 %v615_v59, %s2513_s0  ;;  %617 = vrot.lane.b32.xlu0 %v615_v59, %s2520_s21  ;;  %v2227_v46 = vpack.c.bf16 %v785_v14, %v784_v42  ;;  %v2233_v56 = vpack.c.bf16 %v771_v55, %v770_v54  ;;  %v673_v59 = vrot.slane %v664_v57, %v2733_v40  ;;  %v957_v42 = vld [vmem:[%s3119_s3 + $0x38] sm:$0xff] }
 0x8cb   :  { %2228 = vmatprep.subr.bf16.mxu1 %v2227_v46 }
 0x8cc   :  { %2230 = vmatpush3.bf16.msra.mxu1 %v2229_v49 }
 0x8cd   :  { %2232 = vmatprep.subr.bf16.mxu1 %v2231_v53 }
 0x8ce   :  { %v1338_v44 = vld [vmem:[%s3124_s6 + $0xe0] sm:$0xff] }
 0x8d0   :  { %2234 = vmatpush3.bf16.msra.mxu1 %v2233_v56 }
 0x93b   :  { %v622_v29 = vpop.permute.xlu1 %621  ;;  %v618_v30 = vpop.permute.xlu0 %617 }
 0x93c   :  { %v624_v31 = vsel %vm2740_vm3, %v622_v29, 0.0  ;;  %v620_v32 = vsel %vm2744_vm4, %v618_v30, 0.0  ;;  %v950_v29 = vld [vmem:[%s3119_s3] sm:$0xff]  ;;  %v951_v30 = vld [vmem:[%s3119_s3 + $0x8] sm:$0xff] }
 0x93d   :  { %v630_v33 = vmul.f32 %v629_v26, %v620_v32  ;;  %v641_v35 = vmul.f32 %v640_v28, %v624_v31  ;;  %v2236_v31 = vpack.c.bf16 %v951_v30, %v950_v29  ;;  %v952_v32 = vld [vmem:[%s3119_s3 + $0x10] sm:$0xff]  ;;  %v1756_v30 = vld [vmem:[%s3121_s14] ss:$0 sm:$0xff] }
 0x93f   :  { %v636_v37 = vadd.f32 %v635_v34, %v630_v33  ;;  %v953_v33 = vld [vmem:[%s3119_s3 + $0x18] sm:$0xff] }
 0x940   :  { %v2239_v34 = vpack.c.bf16 %v953_v33, %v952_v32 }
 0x941   :  { %v642_v38 = vadd.f32 %v641_v35, %v636_v37  ;;  %v954_v35 = vld [vmem:[%s3119_s3 + $0x20] sm:$0xff] }
 0x943   :  { %v2869_v39 = vadd.f32 %v646_v36, %v642_v38  ;;  %v955_v36 = vld [vmem:[%s3119_s3 + $0x28] sm:$0xff]  ;;  %v956_v38 = vld [vmem:[%s3119_s3 + $0x30] sm:$0xff] }
 0x944   :  { %v2242_v37 = vpack.c.bf16 %v955_v36, %v954_v35  ;;  %v2245_v14 = vpack.c.bf16 %v957_v42, %v956_v38  ;;  %v1758_v36 = vld [vmem:[%s3122_s19] ss:$0 sm:$0xff]  ;;  %v1190_v38 = vld [vmem:[%s3123_s24 + $0x8] sm:$0xff]  ;;  %v1192_v42 = vld [vmem:[%s3123_s24 + $0x18] sm:$0xff] }
 0x945   :  { %1753 = vmatmul.mubr.msk.f32.vlgmr.msra.gmra.mrb[6].mxu0 %vm521_vm8, %v2869_v39 }
 0x946   :  { %2026 = vmatprep.mubr.msk.f32.mxu0 %vm2511_vm2, %v2512_v12  ;;  %2237 = vmatpush3.bf16.msra.mxu0 %v2236_v31 }
 0x947   :  { %2238 = vmatprep.subr.bf16.mxu0 %v2510_v8 }
 0x94a   :  { %2240 = vmatpush3.bf16.msra.mxu0 %v2239_v34 }
 0x94b   :  { %2241 = vmatprep.subr.bf16.mxu0 %v2510_v8 }
 0x94e   :  { %2243 = vmatpush3.bf16.msra.mxu0 %v2242_v37 }
 0x94f   :  { %2244 = vmatprep.subr.bf16.mxu0 %v2510_v8 }
 0x952   :  { %2246 = vmatpush3.bf16.msra.mxu0 %v2245_v14  ;;  %v1189_v14 = vld [vmem:[%s3123_s24] sm:$0xff] }
 0x953   :  { %2247 = vmatprep.subr.bf16.mxu0 %v2510_v8 }
 0xa18   :  { %v745_v60 = vpop.f32.mrb[6].mxu0 }
 0xa19   :  { %v746_v61 = vadd.f32 %v745_v60, %v669_v58  ;;  %v747_v62 = vpop.f32.mrb[7].mxu0 }
 0xa1a   :  { %v748_v63 = vadd.f32 %v747_v62, %v673_v59  ;;  %v1042_v62 = vld [vmem:[%s3120_s8 + $0x8] sm:$0xff] }
 0xa1b   :  { %v752_v0 = vmul.f32 0.01, %v746_v61  ;;  %vm750_vm12 = vcmp.ge.f32.partialorder %v746_v61, 0.0 }
 0xa1c   :  { %v753_v1 = vmul.f32 0.01, %v748_v63  ;;  %vm751_vm13 = vcmp.ge.f32.partialorder %v748_v63, 0.0 }
 0xa1d   :  { %v754_v3 = vsel %vm750_vm12, %v746_v61, %v752_v0  ;;  %v1041_v61 = vld [vmem:[%s3120_s8] sm:$0xff] }
 0xa1e   :  { %v755_v2 = vsel %vm751_vm13, %v748_v63, %v753_v1 }
 0xa1f   :  { %859 = vmatprep.mubr.f32.mxu1 %v755_v2 }
 0xa20   :  { %860 = vmatmul.mubr.f32.vlgmr.msra.gmra.mrb[2].mxu1 %v754_v3  ;;  %v2248_v3 = vpack.c.bf16 %v1042_v62, %v1041_v61 }
 0xa21   :  { %1297 = vmatprep.mubr.f32.mxu1 %v2512_v12 }
 0xaf3   :  { %v1834_v4 = vpop.f32.mrb[2].mxu1 }
 0xaf4   :  { %v1835_v6 = vpop.f32.mrb[3].mxu1 }
 0xaf5   :  { %v1836_v7 = vadd.f32 %v1835_v6, %v1834_v4  ;;  %v1043_v6 = vld [vmem:[%s3120_s8 + $0x10] sm:$0xff] }
 0xaf7   :  { %v862_v9 = vadd.f32 %v1836_v7, %v1754_v5  ;;  %v1044_v7 = vld [vmem:[%s3120_s8 + $0x18] sm:$0xff] }
 0xaf9   :  { %866 = vrot.lane.b32.xlu0 %v862_v9, %s2521_s29 }
 0xb6b   :  { %v867_v11 = vpop.permute.xlu0 %866 }
 0xb6c   :  { %v869_v15 = vsub.f32 %v862_v9, %v867_v11  ;;  %v1046_v11 = vld [vmem:[%s3120_s8 + $0x28] sm:$0xff] }
 0xb6e   :  { %v1755_v16 = vmul.f32 -1.442695, %v869_v15 }
 0xb70   :  { %2446 = vpow2.f32 %v1755_v16  ;;  %v1047_v16 = vld [vmem:[%s3120_s8 + $0x30] sm:$0xff] }
 0xb7a   :  { %v2447_v17 = vpop.eup %2446 }
 0xb7b   :  { %v873_v18 = vadd.f32 1.0, %v2447_v17  ;;  %v1048_v17 = vld [vmem:[%s3120_s8 + $0x38] sm:$0xff] }
 0xb7d   :  { %2448 = vrcp.f32 %v873_v18  ;;  %v2257_v18 = vpack.c.bf16 %v1048_v17, %v1047_v16  ;;  %v1210_v16 = vld [vmem:[%s3123_s24 + $0xa8] sm:$0xff]  ;;  %v1212_v17 = vld [vmem:[%s3123_s24 + $0xb8] sm:$0xff] }
 0xb87   :  { %v2449_v19 = vpop.eup %2448 }
 0xb88   :  { %v876_v20 = vsub.f32 1.0, %v2449_v19 }
 0xb8a   :  { %925 = vperm.xlu0 %2437, %v876_v20   ;;  %895 = vperm.xlu1 %2436, %v876_v20  }
 0xb8e   :  { %920 = vperm.xlu0 %2437, %v2449_v19   ;;  %890 = vperm.xlu1 %2436, %v2449_v19  }
 0xb92   :  { %2438 = vset.pattern.permute.xlu1 %v2517_v13  ;;  %2440 = vset.pattern.permute.xlu0 %v2517_v13 }
 0xb93   :  { %885 = vperm.xlu1 %2438, %v876_v20  }
 0xb97   :  { %2439 = vset.pattern.permute.xlu1 %v2523_v21 }
 0xb98   :  { %915 = vperm.xlu1 %2439, %v876_v20   ;;  %v1050_v20 = vld [vmem:[%s3120_s8 + $0x48] sm:$0xff] }
 0xc09   :  { %v926_v22 = vpop.permute.xlu0 %925  ;;  %v896_v23 = vpop.permute.xlu1 %895 }
 0xc0a   :  { %v928_v24 = vmul.f32 %v926_v22, %v2869_v39  ;;  %v898_v25 = vmul.f32 %v896_v23, %v2869_v39  ;;  %v1051_v22 = vld [vmem:[%s3120_s8 + $0x50] sm:$0xff]  ;;  %v1052_v23 = vld [vmem:[%s3120_s8 + $0x58] sm:$0xff] }
 0xc0c   :  { %935 = vrot.lane.b32.xlu1 %v928_v24, %s2518_s13  ;;  %905 = vrot.lane.b32.xlu0 %v898_v25, %s2518_s13  ;;  %v2263_v24 = vpack.c.bf16 %v1052_v23, %v1051_v22  ;;  %v1053_v25 = vld [vmem:[%s3120_s8 + $0x60] sm:$0xff]  ;;  %v1214_v23 = vld [vmem:[%s3123_s24 + $0xc8] sm:$0xff] }
 0xc0d   :  { %v921_v26 = vpop.permute.xlu0 %920  ;;  %v891_v13 = vpop.permute.xlu1 %890 }
 0xc0e   :  { %v923_v27 = vmul.f32 %v921_v26, %v2869_v39  ;;  %v893_v28 = vmul.f32 %v891_v13, %v2869_v39  ;;  %v1054_v26 = vld [vmem:[%s3120_s8 + $0x68] sm:$0xff] }
 0xc0f   :  { %v2266_v13 = vpack.c.bf16 %v1054_v26, %v1053_v25  ;;  %v1213_v26 = vld [vmem:[%s3123_s24 + $0xc0] sm:$0xff] }
 0xc10   :  { %910 = vperm.xlu1 %2439, %v2449_v19   ;;  %879 = vperm.xlu0 %2440, %v2449_v19   ;;  %v1049_v19 = vld [vmem:[%s3120_s8 + $0x40] sm:$0xff] }
 0xc11   :  { %v2260_v21 = vpack.c.bf16 %v1050_v20, %v1049_v19  ;;  %v2291_v19 = vpack.c.bf16 %v1212_v17, %v1210_v16  ;;  %v1209_v20 = vld [vmem:[%s3123_s24 + $0xa0] sm:$0xff] }
 0xc12   :  { %v886_v46 = vpop.permute.xlu1 %885  ;;  %v1318_v17 = vld [vmem:[%s3124_s6 + $0x40] sm:$0xff] }
 0xc13   :  { %v888_v48 = vmul.f32 %v886_v46, %v2869_v39 }
 0xc14   :  { %930 = vrot.lane.b32.xlu0 %v923_v27, %s2518_s13  ;;  %900 = vrot.lane.b32.xlu1 %v893_v28, %s2518_s13  ;;  %v1055_v27 = vld [vmem:[%s3120_s8 + $0x70] sm:$0xff]  ;;  %v1056_v28 = vld [vmem:[%s3120_s8 + $0x78] sm:$0xff] }
 0xc15   :  { %2441 = vset.pattern.permute.xlu0 %v2522_v10  ;;  %v1045_v10 = vld [vmem:[%s3120_s8 + $0x20] sm:$0xff]  ;;  %v2269_v29 = vpack.c.bf16 %v1056_v28, %v1055_v27  ;;  %v1218_v28 = vld [vmem:[%s3123_s24 + $0xe8] sm:$0xff] }
 0xc16   :  { %v2254_v15 = vpack.c.bf16 %v1046_v11, %v1045_v10  ;;  %v1205_v11 = vld [vmem:[%s3123_s24 + $0x80] sm:$0xff] }
 0xc17   :  { %v916_v47 = vpop.permute.xlu1 %915 }
 0xc18   :  { %v918_v49 = vmul.f32 %v916_v47, %v2869_v39 }
 0xc7e   :  { %v906_v51 = vpop.permute.xlu0 %905  ;;  %v936_v52 = vpop.permute.xlu1 %935 }
 0xc7f   :  { %v908_v53 = vadd.f32 %v906_v51, %v888_v48  ;;  %v938_v54 = vadd.f32 %v936_v52, %v918_v49  ;;  %v2271_v48 = vpack.c.bf16 %v1192_v42, %v1190_v38  ;;  %v1191_v49 = vld [vmem:[%s3123_s24 + $0x10] sm:$0xff]  ;;  %v1194_v51 = vld [vmem:[%s3123_s24 + $0x28] sm:$0xff]  ;;  %v1196_v52 = vld [vmem:[%s3123_s24 + $0x38] sm:$0xff] }
 0xc81   :  { %940 = vrot.lane.b32.xlu1 %v908_v53, %s2508_s15  ;;  %944 = vrot.lane.b32.xlu0 %v938_v54, %s2508_s15  ;;  %v2273_v53 = vpack.c.bf16 %v1191_v49, %v1189_v14  ;;  %v2275_v54 = vpack.c.bf16 %v1196_v52, %v1194_v51  ;;  %v1311_v52 = vld [vmem:[%s3124_s6 + $0x8] sm:$0xff] }
 0xc82   :  { %2272 = vmatprep.subr.bf16.mxu1 %v2271_v48  ;;  %v1310_v48 = vld [vmem:[%s3124_s6] sm:$0xff] }
 0xc83   :  { %2274 = vmatpush1.bf16.msra.mxu1 %v2273_v53  ;;  %v1328_v53 = vld [vmem:[%s3124_s6 + $0x90] sm:$0xff] }
 0xc84   :  { %2276 = vmatprep.subr.bf16.mxu1 %v2275_v54  ;;  %v1329_v54 = vld [vmem:[%s3124_s6 + $0x98] sm:$0xff] }
 0xc8f   :  { %v911_v55 = vpop.permute.xlu1 %910  ;;  %v880_v56 = vpop.permute.xlu0 %879 }
 0xc90   :  { %v882_v58 = vmul.f32 %v880_v56, %v2869_v39  ;;  %v913_v60 = vmul.f32 %v911_v55, %v2869_v39  ;;  %v2251_v39 = vpack.c.bf16 %v1044_v7, %v1043_v6  ;;  %v1193_v55 = vld [vmem:[%s3123_s24 + $0x20] sm:$0xff]  ;;  %v1195_v56 = vld [vmem:[%s3123_s24 + $0x30] sm:$0xff]  ;;  %v1206_v7 = vld [vmem:[%s3123_s24 + $0x88] sm:$0xff] }
 0xc91   :  { %v1203_v6 = vld [vmem:[%s3123_s24 + $0x70] sm:$0xff] }
 0xc93   :  { %v901_v57 = vpop.permute.xlu1 %900  ;;  %v931_v59 = vpop.permute.xlu0 %930 }
 0xc94   :  { %v903_v63 = vadd.f32 %v901_v57, %v882_v58  ;;  %v933_v0 = vadd.f32 %v931_v59, %v913_v60  ;;  %v1198_v57 = vld [vmem:[%s3123_s24 + $0x48] sm:$0xff]  ;;  %v1200_v59 = vld [vmem:[%s3123_s24 + $0x58] sm:$0xff]  ;;  %v2277_v60 = vpack.c.bf16 %v1195_v56, %v1193_v55 }
 0xc95   :  { %v2279_v62 = vpack.c.bf16 %v1200_v59, %v1198_v57  ;;  %v2305_v57 = vpack.c.bf16 %v1311_v52, %v1310_v48  ;;  %v1312_v59 = vld [vmem:[%s3124_s6 + $0x10] sm:$0xff]  ;;  %v1341_v48 = vld [vmem:[%s3124_s6 + $0xf8] sm:$0xff] }
 0xc96   :  { %2278 = vmatpush1.bf16.msra.mxu1 %v2277_v60  ;;  %v1313_v60 = vld [vmem:[%s3124_s6 + $0x18] sm:$0xff] }
 0xc97   :  { %2280 = vmatprep.subr.bf16.mxu1 %v2279_v62  ;;  %v1330_v62 = vld [vmem:[%s3124_s6 + $0xa0] sm:$0xff]  ;;  %v1325_v52 = vld [vmem:[%s3124_s6 + $0x78] sm:$0xff] }
 0xcf3   :  { %v941_v1 = vpop.permute.xlu1 %940  ;;  %v945_v4 = vpop.permute.xlu0 %944 }
 0xcf4   :  { %v947_v2 = vsel %vm132_vm0, %v903_v63, %v941_v1  ;;  %v1197_v63 = vld [vmem:[%s3123_s24 + $0x40] sm:$0xff]  ;;  %v1202_v1 = vld [vmem:[%s3123_s24 + $0x68] sm:$0xff] }
 0xcf5   :  { %v948_v5 = vsel %vm200_vm5, %v947_v2, %v933_v0  ;;  %v1199_v0 = vld [vmem:[%s3123_s24 + $0x50] sm:$0xff]  ;;  %v1204_v2 = vld [vmem:[%s3123_s24 + $0x78] sm:$0xff] }
 0xcf6   :  { %v949_v9 = vsel %vm607_vm10, %v948_v5, %v945_v4  ;;  %v2283_v4 = vpack.c.bf16 %v1204_v2, %v1202_v1  ;;  %v1201_v5 = vld [vmem:[%s3123_s24 + $0x60] sm:$0xff] }
 0xcf7   :  { %2027 = vmatmul.mubr.msk.f32.vlgmr.msra.gmra.mrb[8].mxu0 %vm521_vm8, %v949_v9  ;;  %v1208_v9 = vld [vmem:[%s3123_s24 + $0x98] sm:$0xff]  ;;  %v1314_v2 = vld [vmem:[%s3124_s6 + $0x20] sm:$0xff] }
 0xcf8   :  { %2249 = vmatpush3.bf16.msra.mxu0 %v2248_v3  ;;  %2061 = vmatprep.mubr.msk.f32.mxu0 %vm2511_vm2, %v2512_v12  ;;  %v2281_v3 = vpack.c.bf16 %v1199_v0, %v1197_v63  ;;  %v2287_v10 = vpack.c.bf16 %v1208_v9, %v1206_v7  ;;  %v1331_v63 = vld [vmem:[%s3124_s6 + $0xa8] sm:$0xff]  ;;  %v2309_v0 = vpack.c.bf16 %v1313_v60, %v1312_v59  ;;  %v1316_v9 = vld [vmem:[%s3124_s6 + $0x30] sm:$0xff]  ;;  %v1423_v60 = vld [vmem:[%s3126_s23 + $0x20] sm:$0xff] }
 0xcf9   :  { %2250 = vmatprep.subr.bf16.mxu0 %v2510_v8  ;;  %v2311_v1 = vpack.c.bf16 %v1331_v63, %v1330_v62  ;;  %v1425_v63 = vld [vmem:[%s3126_s23 + $0x30] sm:$0xff] }
 0xcfa   :  { %2282 = vmatpush1.bf16.msra.mxu1 %v2281_v3  ;;  %v1315_v3 = vld [vmem:[%s3124_s6 + $0x28] sm:$0xff] }
 0xcfb   :  { %2284 = vmatprep.subr.bf16.mxu1 %v2283_v4  ;;  %v1332_v4 = vld [vmem:[%s3124_s6 + $0xb0] sm:$0xff] }
 0xcfc   :  { %2252 = vmatpush3.bf16.msra.mxu0 %v2251_v39  ;;  %v2285_v39 = vpack.c.bf16 %v1203_v6, %v1201_v5  ;;  %v1333_v5 = vld [vmem:[%s3124_s6 + $0xb8] sm:$0xff]  ;;  %v2313_v6 = vpack.c.bf16 %v1315_v3, %v1314_v2  ;;  %v1427_v2 = vld [vmem:[%s3126_s23 + $0x40] sm:$0xff]  ;;  %v1428_v3 = vld [vmem:[%s3126_s23 + $0x48] sm:$0xff] }
 0xcfd   :  { %2253 = vmatprep.subr.bf16.mxu0 %v2510_v8  ;;  %v2315_v7 = vpack.c.bf16 %v1333_v5, %v1332_v4  ;;  %v2348_v4 = vpack.c.bf16 %v1428_v3, %v1427_v2  ;;  %v1429_v5 = vld [vmem:[%s3126_s23 + $0x50] sm:$0xff] }
 0xcfe   :  { %2286 = vmatpush1.bf16.msra.mxu1 %v2285_v39  ;;  %v1317_v39 = vld [vmem:[%s3124_s6 + $0x38] sm:$0xff] }
 0xcff   :  { %2288 = vmatprep.subr.bf16.mxu1 %v2287_v10  ;;  %v1334_v10 = vld [vmem:[%s3124_s6 + $0xc0] sm:$0xff] }
 0xd00   :  { %2255 = vmatpush3.bf16.msra.mxu0 %v2254_v15  ;;  %v1207_v15 = vld [vmem:[%s3123_s24 + $0x90] sm:$0xff] }
 0xd01   :  { %2256 = vmatprep.subr.bf16.mxu0 %v2510_v8 }
 0xd04   :  { %2258 = vmatpush3.bf16.msra.mxu0 %v2257_v18  ;;  %v2289_v18 = vpack.c.bf16 %v1207_v15, %v1205_v11  ;;  %v1335_v11 = vld [vmem:[%s3124_s6 + $0xc8] sm:$0xff]  ;;  %v2317_v15 = vpack.c.bf16 %v1317_v39, %v1316_v9  ;;  %v1431_v9 = vld [vmem:[%s3126_s23 + $0x60] sm:$0xff] }
 0xd05   :  { %2259 = vmatprep.subr.bf16.mxu0 %v2510_v8  ;;  %v2319_v16 = vpack.c.bf16 %v1335_v11, %v1334_v10  ;;  %v1432_v39 = vld [vmem:[%s3126_s23 + $0x68] sm:$0xff]  ;;  %v1221_v11 = vld [vmem:[%s3127_s26] sm:$0x3] }
 0xd06   :  { %2290 = vmatpush1.bf16.msra.mxu1 %v2289_v18  ;;  %v1319_v18 = vld [vmem:[%s3124_s6 + $0x48] sm:$0xff]  ;;  %v2354_v10 = vpack.c.bf16 %v1432_v39, %v1431_v9 }
 0xd07   :  { %2292 = vmatprep.subr.bf16.mxu1 %v2291_v19  ;;  %v1336_v19 = vld [vmem:[%s3124_s6 + $0xd0] sm:$0xff] }
 0xd08   :  { %2261 = vmatpush3.bf16.msra.mxu0 %v2260_v21  ;;  %v1211_v21 = vld [vmem:[%s3123_s24 + $0xb0] sm:$0xff] }
 0xd09   :  { %2262 = vmatprep.subr.bf16.mxu0 %v2510_v8  ;;  %v2293_v22 = vpack.c.bf16 %v1211_v21, %v1209_v20  ;;  %v1337_v20 = vld [vmem:[%s3124_s6 + $0xd8] sm:$0xff]  ;;  %v2321_v21 = vpack.c.bf16 %v1319_v18, %v1318_v17 }
 0xd0b   :  { %2294 = vmatpush1.bf16.msra.mxu1 %v2293_v22  ;;  %v2323_v22 = vpack.c.bf16 %v1337_v20, %v1336_v19 }
 0xd0c   :  { %2264 = vmatpush3.bf16.msra.mxu0 %v2263_v24  ;;  %v1216_v24 = vld [vmem:[%s3123_s24 + $0xd8] sm:$0xff] }
 0xd0d   :  { %2265 = vmatprep.subr.bf16.mxu0 %v2510_v8  ;;  %v2295_v25 = vpack.c.bf16 %v1216_v24, %v1214_v23  ;;  %v1320_v23 = vld [vmem:[%s3124_s6 + $0x50] sm:$0xff]  ;;  %v1321_v24 = vld [vmem:[%s3124_s6 + $0x58] sm:$0xff] }
 0xd0f   :  { %2296 = vmatprep.subr.bf16.mxu1 %v2295_v25  ;;  %v2325_v25 = vpack.c.bf16 %v1321_v24, %v1320_v23 }
 0xd10   :  { %2267 = vmatpush3.bf16.msra.mxu0 %v2266_v13  ;;  %v1215_v13 = vld [vmem:[%s3123_s24 + $0xd0] sm:$0xff] }
 0xd11   :  { %2268 = vmatprep.subr.bf16.mxu0 %v2510_v8  ;;  %v2297_v27 = vpack.c.bf16 %v1215_v13, %v1213_v26  ;;  %v1166_v26 = vld [vmem:[%s3125_s22] sm:$0xf] }
 0xd12   :  { %v1175_v13 = vrot.slane %v1166_v26, %v2733_v40 }
 0xd13   :  { %2298 = vmatpush1.bf16.msra.mxu1 %v2297_v27  ;;  %v1170_v27 = vrot.slane %v1166_v26, %v2735_v41 }
 0xd14   :  { %2270 = vmatpush3.bf16.msra.mxu0 %v2269_v29  ;;  %v1220_v29 = vld [vmem:[%s3123_s24 + $0xf8] sm:$0xff] }
 0xdca   :  { %v1034_v31 = vpop.f32.mrb[8].mxu0 }
 0xdcb   :  { %v1035_v32 = vadd.f32 %v1756_v30, %v1034_v31  ;;  %v2028_v33 = vpop.f32.mrb[9].mxu0  ;;  %v2299_v30 = vpack.c.bf16 %v1220_v29, %v1218_v28  ;;  %v1217_v31 = vld [vmem:[%s3123_s24 + $0xe0] sm:$0xff]  ;;  %v1181_v28 = vrot.slane %v1166_v26, %v2738_v43 }
 0xdcd   :  { %vm1038_vm14 = vcmp.ge.f32.partialorder %v1035_v32, 0.0  ;;  %v1039_v34 = vmul.f32 0.01, %v1035_v32  ;;  %2300 = vmatprep.subr.bf16.mxu1 %v2299_v30 }
 0xdcf   :  { %v1040_v35 = vsel %vm1038_vm14, %v1035_v32, %v1039_v34  ;;  %v1219_v32 = vld [vmem:[%s3123_s24 + $0xf0] sm:$0xff] }
 0xdd0   :  { %2062 = vmatmul.mubr.f32.vlgmr.msra.gmra.mrb[10].mxu0 %v1040_v35  ;;  %v2301_v33 = vpack.c.bf16 %v1219_v32, %v1217_v31 }
 0xdd2   :  { %2302 = vmatpush1.bf16.msra.mxu1 %v2301_v33 }
 0xdd3   :  { %2335 = vmatprep.subr.bf16.mxu1 %v2510_v8 }
 0xea3   :  { %v1130_v37 = vpop.f32.mrb[10].mxu0 }
 0xea4   :  { %v1131_v46 = vadd.f32 %v1758_v36, %v1130_v37  ;;  %v2063_v47 = vpop.f32.mrb[11].mxu0 }
 0xea5   :  { %v1327_v47 = vld [vmem:[%s3124_s6 + $0x88] sm:$0xff] }
 0xea6   :  { %vm1134_vm15 = vcmp.ge.f32.partialorder %v1131_v46, 0.0  ;;  %v1135_v58 = vmul.f32 0.01, %v1131_v46 }
 0xea8   :  { %v1136_v61 = vsel %vm1134_vm15, %v1131_v46, %v1135_v58  ;;  %v1326_v46 = vld [vmem:[%s3124_s6 + $0x80] sm:$0xff]  ;;  %v2307_v58 = vpack.c.bf16 %v1329_v54, %v1328_v53 }
 0xea9   :  { %1141 = vrot.lane.b32.xlu0 %v1136_v61, %s2509_s16  ;;  %1138 = vrot.lane.b32.xlu1 %v1136_v61, %s2508_s15  ;;  %v2303_v51 = vpack.c.bf16 %v1327_v47, %v1326_v46  ;;  %v1323_v46 = vld [vmem:[%s3124_s6 + $0x68] sm:$0xff]  ;;  %v1419_v54 = vld [vmem:[%s3126_s23] sm:$0xff] }
 0xeab   :  { %2304 = vmatprep.subr.bf16.mxu0 %v2303_v51  ;;  %v1324_v51 = vld [vmem:[%s3124_s6 + $0x70] sm:$0xff] }
 0xeac   :  { %2306 = vmatpush3.bf16.msra.mxu0 %v2305_v57  ;;  %v2333_v53 = vpack.c.bf16 %v1325_v52, %v1324_v51  ;;  %v1616_v52 = vld [vmem:[%s2675_s27 + $0x50] sm:$0xff] }
 0xead   :  { %1147 = vrot.lane.b32.xlu0 %v1136_v61, %s2519_s17  ;;  %1144 = vrot.lane.b32.xlu1 %v1136_v61, %s2524_s30 }
 0xeae   :  { %2308 = vmatprep.subr.bf16.mxu0 %v2307_v58  ;;  %v1422_v58 = vld [vmem:[%s3126_s23 + $0x18] sm:$0xff] }
 0xeb0   :  { %2310 = vmatpush3.bf16.msra.mxu0 %v2309_v0  ;;  %v1426_v0 = vld [vmem:[%s3126_s23 + $0x38] sm:$0xff] }
 0xeb1   :  { %2312 = vmatprep.subr.bf16.mxu0 %v2311_v1  ;;  %v2345_v1 = vpack.c.bf16 %v1426_v0, %v1425_v63 }
 0xeb4   :  { %2314 = vmatpush3.bf16.msra.mxu0 %v2313_v6  ;;  %v1430_v6 = vld [vmem:[%s3126_s23 + $0x58] sm:$0xff] }
 0xeb5   :  { %2316 = vmatprep.subr.bf16.mxu0 %v2315_v7  ;;  %v2351_v7 = vpack.c.bf16 %v1430_v6, %v1429_v5  ;;  %v1765_v6 = vld [vmem:[%s2680_s4] ss:$0 sm:$0xff] }
 0xeb8   :  { %2318 = vmatpush3.bf16.msra.mxu0 %v2317_v15  ;;  %v1226_v15 = vrot.slane %v1221_v11, %v2735_v41  ;;  %v1433_v41 = vld [vmem:[%s3126_s23 + $0x70] sm:$0xff] }
 0xeb9   :  { %2320 = vmatprep.subr.bf16.mxu0 %v2319_v16  ;;  %v1230_v16 = vrot.slane %v1221_v11, %v2733_v40  ;;  %v1434_v40 = vld [vmem:[%s3126_s23 + $0x78] sm:$0xff] }
 0xebc   :  { %2322 = vmatpush3.bf16.msra.mxu0 %v2321_v21 }
 0xebd   :  { %2324 = vmatprep.subr.bf16.mxu0 %v2323_v22 }
 0xec0   :  { %2326 = vmatpush3.bf16.msra.mxu0 %v2325_v25  ;;  %v2357_v25 = vpack.c.bf16 %v1434_v40, %v1433_v41 }
 0xf1b   :  { %v1142_v34 = vpop.permute.xlu0 %1141  ;;  %v1139_v35 = vpop.permute.xlu1 %1138 }
 0xf1c   :  { %v1150_v36 = vsel %vm132_vm0, %v1136_v61, %v1139_v35 }
 0xf1d   :  { %v1151_v37 = vsel %vm200_vm5, %v1150_v36, %v1139_v35  ;;  %vm1521_vm5 = vcmask 31744  }
 0xf1e   :  { %v1152_v38 = vsel %vm607_vm10, %v1151_v37, %v1142_v34  ;;  %v1187_v37 = vrot.slane %v1166_v26, %v2751_v50  ;;  %v1340_v50 = vld [vmem:[%s3124_s6 + $0xf0] sm:$0xff] }
 0xf1f   :  { %v1153_v42 = vsel %vm521_vm8, %v1152_v38, %v1142_v34  ;;  %v1145_v14 = vpop.permute.xlu1 %1144  ;;  %v1148_v55 = vpop.permute.xlu0 %1147 }
 0xf20   :  { %v1155_v49 = vsel %vm1154_vm1, %v1153_v42, %v1145_v14  ;;  %v1339_v42 = vld [vmem:[%s3124_s6 + $0xe8] sm:$0xff] }
 0xf21   :  { %v1157_v56 = vsel %vm1156_vm6, %v1155_v49, %v1145_v14  ;;  %v2327_v45 = vpack.c.bf16 %v1339_v42, %v1338_v44  ;;  %v1322_v14 = vld [vmem:[%s3124_s6 + $0x60] sm:$0xff]  ;;  %v2331_v49 = vpack.c.bf16 %v1341_v48, %v1340_v50 }
 0xf22   :  { %v1159_v61 = vsel %vm1158_vm7, %v1157_v56, %v1148_v55  ;;  %v2329_v47 = vpack.c.bf16 %v1323_v46, %v1322_v14  ;;  %v1420_v55 = vld [vmem:[%s3126_s23 + $0x8] sm:$0xff]  ;;  %v1421_v56 = vld [vmem:[%s3126_s23 + $0x10] sm:$0xff]  ;;  %v1610_v42 = vld [vmem:[%s2675_s27 + $0x20] sm:$0xff] }
 0xf23   :  { %1163 = vrot.lane.b32.xlu0 %v1159_v61, %s2513_s0  ;;  %1160 = vrot.lane.b32.xlu1 %v1159_v61, %s2525_s18  ;;  %v1176_v33 = vmul.f32 %v1175_v13, %v1159_v61  ;;  %v2336_v57 = vpack.c.bf16 %v1420_v55, %v1419_v54  ;;  %v2339_v59 = vpack.c.bf16 %v1422_v58, %v1421_v56  ;;  %v1424_v61 = vld [vmem:[%s3126_s23 + $0x28] sm:$0xff]  ;;  %v1759_v13 = vld [vmem:[%s3128_s28] ss:$0 sm:$0xff] }
 0xf24   :  { %2328 = vmatprep.subr.bf16.mxu0 %v2327_v45  ;;  %v2342_v62 = vpack.c.bf16 %v1424_v61, %v1423_v60  ;;  %v1611_v45 = vld [vmem:[%s2675_s27 + $0x28] sm:$0xff]  ;;  %v1612_v46 = vld [vmem:[%s2675_s27 + $0x30] sm:$0xff]  ;;  %v1614_v48 = vld [vmem:[%s2675_s27 + $0x40] sm:$0xff] }
 0xf25   :  { %2330 = vmatpush3.bf16.msra.mxu0 %v2329_v47  ;;  %v2366_v14 = vpack.c.bf16 %v1611_v45, %v1610_v42  ;;  %v1613_v47 = vld [vmem:[%s2675_s27 + $0x38] sm:$0xff]  ;;  %v1618_v55 = vld [vmem:[%s2675_s27 + $0x60] sm:$0xff]  ;;  %v1619_v56 = vld [vmem:[%s2675_s27 + $0x68] sm:$0xff] }
 0xf26   :  { %2332 = vmatprep.subr.bf16.mxu0 %v2331_v49  ;;  %v2369_v50 = vpack.c.bf16 %v1613_v47, %v1612_v46  ;;  %v1615_v49 = vld [vmem:[%s2675_s27 + $0x48] sm:$0xff]  ;;  %v1620_v58 = vld [vmem:[%s2675_s27 + $0x70] sm:$0xff]  ;;  %v1761_v61 = vld [vmem:[%s2670_s20] ss:$0 sm:$0xff] }
 0xf27   :  { %v2372_v51 = vpack.c.bf16 %v1615_v49, %v1614_v48 }
 0xf29   :  { %2334 = vmatpush3.bf16.msra.mxu0 %v2333_v53  ;;  %v1617_v53 = vld [vmem:[%s2675_s27 + $0x58] sm:$0xff] }
 0xf2a   :  { %2099 = vmatprep.subr.mxu0 %v2512_v12  ;;  %v2375_v54 = vpack.c.bf16 %v1617_v53, %v1616_v52 }
 0xf95   :  { %v1164_v29 = vpop.permute.xlu0 %1163  ;;  %v1161_v30 = vpop.permute.xlu1 %1160 }
 0xf96   :  { %v1165_v31 = vsel %vm2740_vm3, %v1164_v29, 0.0  ;;  %v1162_v32 = vsel %vm2744_vm4, %v1161_v30, 0.0  ;;  %v1513_v30 = vld [vmem:[%s3129_s1] sm:$0xf]  ;;  %vm1525_vm4 = vcmask 1043456  }
 0xf97   :  { %v1171_v34 = vmul.f32 %v1170_v27, %v1162_v32  ;;  %v1182_v35 = vmul.f32 %v1181_v28, %v1165_v31  ;;  %v1760_v31 = vld [vmem:[%s3130_s2] ss:$0 sm:$0xff] }
 0xf99   :  { %v1177_v36 = vadd.f32 %v1176_v33, %v1171_v34 }
 0xf9b   :  { %v1183_v43 = vadd.f32 %v1182_v35, %v1177_v36  ;;  %v1606_v36 = vld [vmem:[%s2675_s27] sm:$0xff] }
 0xf9d   :  { %v1188_v38 = vadd.f32 %v1187_v37, %v1183_v43  ;;  %v1607_v37 = vld [vmem:[%s2675_s27 + $0x8] sm:$0xff] }
 0xf9e   :  { %v2360_v43 = vpack.c.bf16 %v1607_v37, %v1606_v36 }
 0xf9f   :  { %1298 = vmatmul.mubr.f32.vlgmr.msra.gmra.mrb[4].mxu1 %v1188_v38  ;;  %v1609_v38 = vld [vmem:[%s2675_s27 + $0x18] sm:$0xff] }
 0xfa0   :  { %2096 = vmatprep.mubr.msk.f32.mxu1 %vm2511_vm2, %v2512_v12  ;;  %2337 = vmatpush3.bf16.msra.mxu1 %v2336_v57  ;;  %v2378_v57 = vpack.c.bf16 %v1619_v56, %v1618_v55 }
 0xfa1   :  { %2338 = vmatprep.subr.bf16.mxu1 %v2510_v8 }
 0xfa4   :  { %2340 = vmatpush3.bf16.msra.mxu1 %v2339_v59  ;;  %v1621_v59 = vld [vmem:[%s2675_s27 + $0x78] sm:$0xff] }
 0xfa5   :  { %2341 = vmatprep.subr.bf16.mxu1 %v2510_v8  ;;  %v2381_v60 = vpack.c.bf16 %v1621_v59, %v1620_v58 }
 0xfa8   :  { %2343 = vmatpush3.bf16.msra.mxu1 %v2342_v62 }
 0xfa9   :  { %2344 = vmatprep.subr.bf16.mxu1 %v2510_v8 }
 0xfac   :  { %2346 = vmatpush3.bf16.msra.mxu1 %v2345_v1 }
 0xfad   :  { %2347 = vmatprep.subr.bf16.mxu1 %v2510_v8 }
 0xfb0   :  { %2349 = vmatpush3.bf16.msra.mxu1 %v2348_v4 }
 0xfb1   :  { %2350 = vmatprep.subr.bf16.mxu1 %v2510_v8 }
 0xfb4   :  { %2352 = vmatpush3.bf16.msra.mxu1 %v2351_v7 }
 0xfb5   :  { %2353 = vmatprep.subr.bf16.mxu1 %v2510_v8 }
 0xfb8   :  { %2355 = vmatpush3.bf16.msra.mxu1 %v2354_v10 }
 0xfb9   :  { %2356 = vmatprep.subr.bf16.mxu1 %v2510_v8 }
 0xfbc   :  { %2358 = vmatpush3.bf16.msra.mxu1 %v2357_v25 }
 0xfbd   :  { %2359 = vmatprep.subr.bf16.mxu1 %v2510_v8 }
0x1072   :  { %v1299_v17 = vpop.f32.mrb[4].mxu1 }
0x1073   :  { %v1300_v18 = vadd.f32 %v1299_v17, %v1226_v15  ;;  %v1301_v19 = vpop.f32.mrb[5].mxu1 }
0x1074   :  { %v1302_v20 = vadd.f32 %v1301_v19, %v1230_v16 }
0x1075   :  { %v1306_v21 = vmul.f32 0.01, %v1300_v18  ;;  %vm1304_vm0 = vcmp.ge.f32.partialorder %v1300_v18, 0.0 }
0x1076   :  { %v1307_v22 = vmul.f32 0.01, %v1302_v20  ;;  %vm1305_vm3 = vcmp.ge.f32.partialorder %v1302_v20, 0.0 }
0x1077   :  { %v1308_v24 = vsel %vm1304_vm0, %v1300_v18, %v1306_v21 }
0x1078   :  { %v1309_v23 = vsel %vm1305_vm3, %v1302_v20, %v1307_v22 }
0x1079   :  { %1413 = vmatprep.mubr.f32.mxu0 %v1309_v23 }
0x107a   :  { %1414 = vmatmul.mubr.f32.vlgmr.msra.gmra.mrb[12].mxu0 %v1308_v24 }
0x107b   :  { %2101 = vmatprep.mubr.msk.f32.mxu0 %vm2511_vm2, %v2512_v12  ;;  %2100 = vmatpush3.msk.msra.mxu0 %vm1525_vm4, %v1513_v30 }
0x114d   :  { %v1895_v26 = vpop.f32.mrb[12].mxu0 }
0x114e   :  { %v1896_v27 = vpop.f32.mrb[13].mxu0 }
0x114f   :  { %v1897_v28 = vadd.f32 %v1896_v27, %v1895_v26 }
0x1151   :  { %v1416_v29 = vadd.f32 %v1897_v28, %v1759_v13 }
0x1153   :  { %2097 = vmatmul.mubr.f32.vlgmr.msra.gmra.mrb[6].mxu1 %v1416_v29 }
0x1154   :  { %2136 = vmatprep.mubr.msk.f32.mxu1 %vm2511_vm2, %v2512_v12  ;;  %2361 = vmatpush3.bf16.msra.mxu1 %v2360_v43  ;;  %v1608_v12 = vld [vmem:[%s2675_s27 + $0x10] sm:$0xff]  ;;  %s2526_s27 = smov [#allocation2]   ;;  %vm1699_vm2 = vcmask 64512  }
0x1155   :  { %2362 = vmatprep.subr.bf16.mxu1 %v2510_v8  ;;  %v2363_v44 = vpack.c.bf16 %v1609_v38, %v1608_v12  ;;  %s1707_s7 = sshll.u32 %s2526_s27, 4  ;;  %s1708_s7 = int_to_ptr.vmem [resolvable:$true] %s1707_s7 }
0x1156   :  { %s2454_s20 = scalar_lea.vmem %s1708_s7, 128  ;;  %p2459_p1 = scmp.lt.s32.totalorder %s1708_s7, %s1708_s7 }
0x1157   :  { %p2455_p0 = scmp.ne.s32.totalorder %s1708_s7, %s2454_s20  ;;  %p2460_p2 = scmp.lt.s32.totalorder %s2454_s20, %s2454_s20 }
0x1158   :  { %2364 = vmatpush3.bf16.msra.mxu1 %v2363_v44 }
0x1159   :  { %2365 = vmatprep.subr.bf16.mxu1 %v2510_v8  ;;  %p2461_p3 = por %p2460_p2, %p2459_p1 }
0x115b   :  { %p2462_p4 = pnand %p2461_p3, %p2455_p0 }
0x115c   :  { %2367 = vmatpush3.bf16.msra.mxu1 %v2366_v14 }
0x115d   :  { %2368 = vmatprep.subr.bf16.mxu1 %v2510_v8 }
0x1160   :  { %2370 = vmatpush3.bf16.msra.mxu1 %v2369_v50 }
0x1161   :  { %2371 = vmatprep.subr.bf16.mxu1 %v2510_v8 }
0x1164   :  { %2373 = vmatpush3.bf16.msra.mxu1 %v2372_v51 }
0x1165   :  { %2374 = vmatprep.subr.bf16.mxu1 %v2510_v8 }
0x1168   :  { %2376 = vmatpush3.bf16.msra.mxu1 %v2375_v54 }
0x1169   :  { %2377 = vmatprep.subr.bf16.mxu1 %v2510_v8 }
0x116c   :  { %2379 = vmatpush3.bf16.msra.mxu1 %v2378_v57 }
0x116d   :  { %2380 = vmatprep.subr.bf16.mxu1 %v2510_v8 }
0x1170   :  { %2382 = vmatpush3.bf16.msra.mxu1 %v2381_v60 }
0x1226   :  { %v1508_v32 = vpop.f32.mrb[6].mxu1 }
0x1227   :  { %v1509_v33 = vadd.f32 %v1760_v31, %v1508_v32  ;;  %v2098_v34 = vpop.f32.mrb[7].mxu1 }
0x1229   :  { %v1512_v35 = vmax.f32 %v1509_v33, 0.0 }
0x122b   :  { %2102 = vmatmul.mubr.msk.f32.vlgmr.msra.gmra.mrb[14].mxu0 %vm1521_vm5, %v1512_v35 }
0x12fe   :  { %v1595_v62 = vpop.f32.mrb[14].mxu0 }
0x12ff   :  { %v1596_v63 = vadd.f32 %v1761_v61, %v1595_v62  ;;  %v2103_v0 = vpop.f32.mrb[15].mxu0 }
0x1301   :  { %v1764_v1 = vmul.f32 -1.442695, %v1596_v63 }
0x1303   :  { %2450 = vpow2.f32 %v1764_v1 }
0x130d   :  { %v2451_v2 = vpop.eup %2450 }
0x130e   :  { %v1602_v3 = vadd.f32 1.0, %v2451_v2 }
0x1310   :  { %2452 = vrcp.f32 %v1602_v3 }
0x131a   :  { %v2453_v4 = vpop.eup %2452 }
0x131b   :  { %v1605_v5 = vmul.f32 %v2453_v4, %v1416_v29 }
0x131d   :  { %2137 = vmatmul.mubr.f32.vlgmr.msra.gmra.mrb[8].mxu1 %v1605_v5 }
0x13f0   :  { %v1695_v7 = vpop.f32.mrb[8].mxu1 }
0x13f1   :  { %v1696_v9 = vadd.f32 %v1765_v6, %v1695_v7  ;;  %v2138_v8 = vpop.f32.mrb[9].mxu1 }
0x13f3   :  { %1700 = vst.msk [vmem:[#allocation2] sm:$0xff] %vm1699_vm2, %v1696_v9 }
0x13f4   :  { %2465 = shalt.err (!%p2462_p4)
}
0x13f5   :  { %s2466_s10 = scalar_lea.hbm %s2685_s12, 128 }
0x13f6   :  { %p2467_p5 = scmp.ne.s32.totalorder %s2685_s12, %s2466_s10  ;;  %p2470_p6 = scmp.lt.u32.totalorder %s2466_s10, %s2685_s12 }
0x13f8   :  { %p2472_p7 = pnand %p2470_p6, %p2467_p5 }
0x13fa   :  { %2475 = shalt.err (!%p2472_p7)
}
0x13fb   :  { %1710 = dma.vmem_to_hbm [thread:$0]  %s1708_s7, 128, %s2685_s12, [#allocation3]  }
0x13fc   :  { %2476 = dma.done.wait [#allocation3], 128  }
0x13fd   :  { %2477 = vsyncadd [#allocation3], 4294967168 }
0x13fe   :  { %1714 = vsyncpa [#allocation3], 1 }

</bundles_post_ra>
